<compile_context>
chip_gen: v7x
topology: tpu7x:2x2x1
jax: 0.10.0
libtpu: 0.0.40
codegen_flags: <defaults>
</compile_context>

<pallas_src>
import functools

import jax
import jax.numpy as jnp
from jax import lax
from jax.experimental import pallas as pl
from jax.experimental.pallas import tpu as pltpu

P_APPLY = 0.5
RADIUS_MIN = 0.1
RADIUS_MAX = 2.0
MAX_RADIUS_PX = 6                  # ceil(3 * RADIUS_MAX): static Gaussian truncation
K = 2 * MAX_RADIUS_PX + 1          # 13 taps (beyond 3*sigma the taps are ~0)

PAD_H = 8                          # vertical halo: >= MAX_RADIUS_PX, sublane aligned
PAD_W = 128                        # horizontal halo: >= MAX_RADIUS_PX, lane aligned
_MAX_SINGLE_W_TILE = 1024          # below this, one column tile (no W banding needed)
MATMUL_DTYPE = jnp.bfloat16        # MXU input dtype; accumulation stays f32


def _pick_row_tile(h):
    # 256 is a good default on v6e/v7x; on v6e (128 MiB VMEM) 512 also works.
    for t in (256, 128, 64, 32, 16, 8):
        if h % t == 0:
            return t
    return h


def _pick_col_tile(w):
    if w <= _MAX_SINGLE_W_TILE or w % 128 != 0:
        return w                   # single column tile; band_w == w, no halo waste
    for t in (256, 512, 128):
        if w % t == 0:
            return t
    return w


def _gaussian_taps(radius):
    """Normalized 1-D Gaussian taps; PIL's radius is the Gaussian sigma."""
    offs = jnp.arange(-MAX_RADIUS_PX, MAX_RADIUS_PX + 1, dtype=jnp.float32)
    wgt = jnp.exp(-0.5 * jnp.square(offs / radius))
    return wgt / jnp.sum(wgt)


def _vert_band_block(taps, row0, hstart, th, band_h, h):
    """(th, band_h) block: rows = output rows of this tile, cols = source rows.

    Entry [r, c] = sum_t taps[t] * [hstart + c == clip(row0 + r + t - R, 0, h-1)],
    i.e. the replicate-edge clamp is folded into the band block.
    """
    out_r = lax.broadcasted_iota(jnp.int32, (th, band_h), 0) + row0
    src_r = lax.broadcasted_iota(jnp.int32, (th, band_h), 1) + hstart
    m = jnp.zeros((th, band_h), jnp.float32)
    for t in range(K):
        tgt = jnp.clip(out_r + (t - MAX_RADIUS_PX), 0, h - 1)
        m = m + jnp.where(src_r == tgt, taps[t], 0.0)
    return m.astype(MATMUL_DTYPE)


def _horiz_band_block(taps, col0, wstart, tw, band_w, w):
    """(band_w, tw) block: rows = source cols of the band, cols = output cols."""
    src_c = lax.broadcasted_iota(jnp.int32, (band_w, tw), 0) + wstart
    out_c = lax.broadcasted_iota(jnp.int32, (band_w, tw), 1) + col0
    m = jnp.zeros((band_w, tw), jnp.float32)
    for t in range(K):
        tgt = jnp.clip(out_c + (t - MAX_RADIUS_PX), 0, w - 1)
        m = m + jnp.where(src_c == tgt, taps[t], 0.0)
    return m.astype(MATMUL_DTYPE)


def _blur_kernel(apply_ref, taps_ref, x_ref, o_ref, *, h, w, th, tw,
                 band_h, band_w):
    """One (th, tw) output tile of one channel.

    apply_ref: (N,)   int32 SMEM   per-image gate (1 = blur, 0 = passthrough)
    taps_ref : (N, K) f32   SMEM   per-image normalized Gaussian taps
    x_ref    : (H, W)       VMEM   one image channel (resident across spatial tiles)
    o_ref    : (th, tw)     VMEM   output tile (exact width, no lane padding)
    """
    img = pl.program_id(0)
    kh = pl.program_id(2)
    kw = pl.program_id(3)

    row0 = kh * th                       # first output row of this tile
    col0 = kw * tw                       # first output column of this tile

    # Source-band origins; the clamp keeps the band inside the channel while
    # still covering every (edge-clipped) source pixel the tile needs.
    if band_h == h:
        hstart = 0
    else:
        hstart = pl.multiple_of(jnp.clip(row0 - PAD_H, 0, h - band_h), 8)
    if band_w == w:
        wstart = 0
    else:
        wstart = pl.multiple_of(jnp.clip(col0 - PAD_W, 0, w - band_w), 128)

    @pl.when(apply_ref[img] != 0)
    def _blur():
        taps = [taps_ref[img, t] for t in range(K)]
        bh = _vert_band_block(taps, row0, hstart, th, band_h, h)    # (th, band_h)
        bwt = _horiz_band_block(taps, col0, wstart, tw, band_w, w)  # (band_w, tw)
        slab = x_ref[pl.ds(hstart, band_h),
                     pl.ds(wstart, band_w)].astype(MATMUL_DTYPE)    # (band_h, band_w)
        tmp = jnp.dot(bh, slab, preferred_element_type=jnp.float32)  # (th, band_w)
        out = jnp.dot(tmp.astype(MATMUL_DTYPE), bwt,
                      preferred_element_type=jnp.float32)            # (th, tw)
        o_ref[...] = out.astype(o_ref.dtype)

    @pl.when(apply_ref[img] == 0)
    def _copy():
        r0 = 0 if th == h else pl.multiple_of(row0, 8)
        c0 = 0 if tw == w else pl.multiple_of(col0, 128)
        o_ref[...] = x_ref[pl.ds(r0, th), pl.ds(c0, tw)].astype(o_ref.dtype)


def gaussian_blur_pallas(x, taps, apply=None):
    """Batched separable Gaussian blur with replicate edges.

    x:     (N, C, H, W) image batch.
    taps:  (N, K) normalized per-image 1-D Gaussian taps.
    apply: (N,) int32 gate (1 = blur, 0 = passthrough). Defaults to all ones.
    """
    n, c, h, w = x.shape
    if apply is None:
        apply = jnp.ones((n,), jnp.int32)
    apply = apply.astype(jnp.int32)
    taps = taps.astype(jnp.float32)

    th = _pick_row_tile(h)
    tw = _pick_col_tile(w)
    band_h = min(h, th + 2 * PAD_H)
    band_w = min(w, tw + 2 * PAD_W)

    kernel = functools.partial(_blur_kernel, h=h, w=w, th=th, tw=tw,
                               band_h=band_h, band_w=band_w)

    return pl.pallas_call(
        kernel,
        out_shape=jax.ShapeDtypeStruct((n, c, h, w), x.dtype),
        grid=(n, c, h // th, w // tw),
        in_specs=[
            pl.BlockSpec(memory_space=pltpu.MemorySpace.SMEM),   # apply gate
            pl.BlockSpec(memory_space=pltpu.MemorySpace.SMEM),   # taps
            # One channel, DMA'd once and revisited across all (kh, kw) tiles.
            pl.BlockSpec((None, None, h, w), lambda i, j, kh, kw: (i, j, 0, 0)),
        ],
        out_specs=pl.BlockSpec((None, None, th, tw),
                               lambda i, j, kh, kw: (i, j, kh, kw)),
        compiler_params=pltpu.CompilerParams(
            dimension_semantics=("parallel", "parallel", "parallel", "parallel"),
            vmem_limit_bytes=64 * 1024 * 1024),
    )(apply, taps, x)


def random_gaussian_blur(x, key, p=P_APPLY,
                         radius_min=RADIUS_MIN, radius_max=RADIUS_MAX):
    """Single-image (C, H, W) equivalent of RandomGaussianBlur.forward.

    lax.cond skips the blur kernel entirely when the Bernoulli gate fails —
    matching `if random.random() > p: return tensor`.
    """
    k_gate, k_radius = jax.random.split(key)
    u = jax.random.uniform(k_gate)
    radius = jax.random.uniform(k_radius, minval=radius_min, maxval=radius_max)

    def _blur(img):
        taps = _gaussian_taps(radius)
        return gaussian_blur_pallas(img[None], taps[None])[0]

    return lax.cond(u <= p, _blur, lambda img: img, x)


def random_gaussian_blur_batch(x, key, p=P_APPLY,
                               radius_min=RADIUS_MIN, radius_max=RADIUS_MAX):
    """Batched (N, C, H, W) version: one pallas_call for the whole batch.

    Each image draws its own gate and radius (torch applies the module per
    sample).  Gate-failed images hit the pl.when copy path inside the kernel,
    skipping the matmuls entirely.
    """
    n = x.shape[0]
    k_gate, k_radius = jax.random.split(key)
    u = jax.random.uniform(k_gate, (n,))
    radius = jax.random.uniform(k_radius, (n,), minval=radius_min,
                                maxval=radius_max)
    taps = jax.vmap(_gaussian_taps)(radius)                 # (N, K)
    apply = (u <= p).astype(jnp.int32)                      # per-image gate
    return gaussian_blur_pallas(x, taps, apply)


def _reference_blur(x, taps):
    """Pure-JAX f32 separable blur with edge padding (correctness oracle)."""
    r = MAX_RADIUS_PX
    _, _, h, w = x.shape
    xp = jnp.pad(x, ((0, 0), (0, 0), (r, r), (r, r)), mode="edge")
    wk = taps[:, :, None, None, None]                       # (N, K, 1, 1, 1)
    vert = sum(wk[:, k] * xp[:, :, k:k + h, :] for k in range(K))
    return sum(wk[:, k] * vert[:, :, :, k:k + w] for k in range(K))


if __name__ == "__main__":
    key = jax.random.PRNGKey(0)
    k_img, k_img2, k_aug, k_aug2 = jax.random.split(key, 4)

    # Small NCHW batch of images in [0, 1].
    x = jax.random.uniform(k_img, (2, 4, 16, 16), dtype=jnp.float32)

    # 1) Forced-blur correctness against the pure-JAX f32 separable reference.
    #    (bf16 MXU inputs + f32 accumulation keep abs error ~1e-2 on [0, 1].)
    radius = jnp.array([0.7, 1.8], jnp.float32)
    taps = jax.vmap(_gaussian_taps)(radius)
    got = jax.block_until_ready(gaussian_blur_pallas(x, taps))
    want = _reference_blur(x, taps)
    assert got.shape == x.shape and got.dtype == x.dtype
    assert float(jnp.max(jnp.abs(got - want))) < 3e-2

    # 1b) Multi-row-tile banded path (H=48 -> TH=16, band=32, dynamic hstart).
    x2 = jax.random.uniform(k_img2, (1, 2, 48, 16), dtype=jnp.float32)
    taps2 = jax.vmap(_gaussian_taps)(jnp.array([1.3], jnp.float32))
    got2 = jax.block_until_ready(gaussian_blur_pallas(x2, taps2))
    want2 = _reference_blur(x2, taps2)
    assert float(jnp.max(jnp.abs(got2 - want2))) < 3e-2

    # 1c) Gate-failed images must pass through bit-exactly (pl.when copy path).
    apply = jnp.array([1, 0], jnp.int32)
    mixed = jax.block_until_ready(gaussian_blur_pallas(x, taps, apply))
    assert bool(jnp.all(mixed[1] == x[1]))
    assert float(jnp.max(jnp.abs(mixed[0] - want[0]))) < 3e-2

    # 2) The actual augmentation: batched (one pallas_call) and single-image
    #    (lax.cond skips the kernel when the gate fails).
    out_batch = jax.block_until_ready(jax.jit(random_gaussian_blur_batch)(x, k_aug))
    out_single = jax.block_until_ready(jax.jit(random_gaussian_blur)(x[0], k_aug2))
    assert out_batch.shape == x.shape and out_batch.dtype == x.dtype
    assert out_single.shape == x.shape[1:] and out_single.dtype == x.dtype
    assert bool(jnp.all(jnp.isfinite(out_batch)))
    assert bool(jnp.all(jnp.isfinite(out_single)))

    print("KERNEL_OK")
</pallas_src>

<mosaic_0001>
module attributes {stable_mosaic.version = 11 : i64} {
  func.func @_blur_kernel(%arg0: i32, %arg1: i32, %arg2: i32, %arg3: i32, %arg4: memref<2xi32, #tpu.memory_space<smem>>, %arg5: memref<2x13xf32, #tpu.memory_space<smem>>, %arg6: memref<1x1x16x16xf32, #tpu.memory_space<vmem>>, %arg7: memref<1x1x16x16xf32, #tpu.memory_space<vmem>>) attributes {dimension_semantics = [#tpu.dimension_semantics<parallel>, #tpu.dimension_semantics<parallel>, #tpu.dimension_semantics<parallel>, #tpu.dimension_semantics<parallel>], iteration_bounds = array<i64: 2, 4, 1, 1>, scalar_prefetch = 0 : i64, scratch_operands = 0 : i64, tpu.core_type = #tpu.core_type<tc>, window_params = [{transform_indices = @transform_0, window_bounds = array<i64: 2>}, {transform_indices = @transform_1, window_bounds = array<i64: 2, 13>}, {transform_indices = @transform_2, window_bounds = array<i64: 1, 1, 16, 16>}, {transform_indices = @transform_3, window_bounds = array<i64: 1, 1, 16, 16>}]} {
    %c16_i32 = arith.constant 16 : i32
    %0 = arith.muli %arg2, %c16_i32 : i32
    %c16_i32_0 = arith.constant 16 : i32
    %1 = arith.muli %arg3, %c16_i32_0 : i32
    %2 = arith.index_cast %arg0 : i32 to index
    %3 = memref.load %arg4[%2] : memref<2xi32, #tpu.memory_space<smem>>
    %c0_i32 = arith.constant 0 : i32
    %4 = arith.cmpi ne, %3, %c0_i32 : i32
    %5 = arith.extui %4 : i1 to i32
    %c0_i32_1 = arith.constant 0 : i32
    %6 = arith.cmpi ne, %5, %c0_i32_1 : i32
    scf.if %6 {
      %12 = arith.index_cast %arg0 : i32 to index
      %c0 = arith.constant 0 : index
      %13 = memref.load %arg5[%12, %c0] : memref<2x13xf32, #tpu.memory_space<smem>>
      %14 = arith.index_cast %arg0 : i32 to index
      %c1 = arith.constant 1 : index
      %15 = memref.load %arg5[%14, %c1] : memref<2x13xf32, #tpu.memory_space<smem>>
      %16 = arith.index_cast %arg0 : i32 to index
      %c2 = arith.constant 2 : index
      %17 = memref.load %arg5[%16, %c2] : memref<2x13xf32, #tpu.memory_space<smem>>
      %18 = arith.index_cast %arg0 : i32 to index
      %c3 = arith.constant 3 : index
      %19 = memref.load %arg5[%18, %c3] : memref<2x13xf32, #tpu.memory_space<smem>>
      %20 = arith.index_cast %arg0 : i32 to index
      %c4 = arith.constant 4 : index
      %21 = memref.load %arg5[%20, %c4] : memref<2x13xf32, #tpu.memory_space<smem>>
      %22 = arith.index_cast %arg0 : i32 to index
      %c5 = arith.constant 5 : index
      %23 = memref.load %arg5[%22, %c5] : memref<2x13xf32, #tpu.memory_space<smem>>
      %24 = arith.index_cast %arg0 : i32 to index
      %c6 = arith.constant 6 : index
      %25 = memref.load %arg5[%24, %c6] : memref<2x13xf32, #tpu.memory_space<smem>>
      %26 = arith.index_cast %arg0 : i32 to index
      %c7 = arith.constant 7 : index
      %27 = memref.load %arg5[%26, %c7] : memref<2x13xf32, #tpu.memory_space<smem>>
      %28 = arith.index_cast %arg0 : i32 to index
      %c8 = arith.constant 8 : index
      %29 = memref.load %arg5[%28, %c8] : memref<2x13xf32, #tpu.memory_space<smem>>
      %30 = arith.index_cast %arg0 : i32 to index
      %c9 = arith.constant 9 : index
      %31 = memref.load %arg5[%30, %c9] : memref<2x13xf32, #tpu.memory_space<smem>>
      %32 = arith.index_cast %arg0 : i32 to index
      %c10 = arith.constant 10 : index
      %33 = memref.load %arg5[%32, %c10] : memref<2x13xf32, #tpu.memory_space<smem>>
      %34 = arith.index_cast %arg0 : i32 to index
      %c11 = arith.constant 11 : index
      %35 = memref.load %arg5[%34, %c11] : memref<2x13xf32, #tpu.memory_space<smem>>
      %36 = arith.index_cast %arg0 : i32 to index
      %c12 = arith.constant 12 : index
      %37 = memref.load %arg5[%36, %c12] : memref<2x13xf32, #tpu.memory_space<smem>>
      %38 = tpu.iota {dimensions = array<i32: 0>} : vector<16x16xi32>
      %39 = vector.broadcast %0 : i32 to vector<16x16xi32>
      %40 = arith.addi %38, %39 : vector<16x16xi32>
      %41 = tpu.iota {dimensions = array<i32: 1>} : vector<16x16xi32>
      %c0_i32_4 = arith.constant 0 : i32
      %42 = vector.broadcast %c0_i32_4 : i32 to vector<16x16xi32>
      %43 = arith.addi %41, %42 : vector<16x16xi32>
      %cst = arith.constant 0.000000e+00 : f32
      %44 = vector.broadcast %cst : f32 to vector<16x16xf32>
      %c-6_i32 = arith.constant -6 : i32
      %45 = vector.broadcast %c-6_i32 : i32 to vector<16x16xi32>
      %46 = arith.addi %40, %45 : vector<16x16xi32>
      %c0_i32_5 = arith.constant 0 : i32
      %c15_i32 = arith.constant 15 : i32
      %47 = vector.broadcast %c0_i32_5 : i32 to vector<16x16xi32>
      %48 = arith.maxsi %47, %46 : vector<16x16xi32>
      %49 = vector.broadcast %c15_i32 : i32 to vector<16x16xi32>
      %50 = arith.minsi %49, %48 : vector<16x16xi32>
      %51 = arith.cmpi eq, %43, %50 : vector<16x16xi32>
      %cst_6 = arith.constant 0.000000e+00 : f32
      %52 = vector.broadcast %13 : f32 to vector<16x16xf32>
      %53 = vector.broadcast %cst_6 : f32 to vector<16x16xf32>
      %54 = arith.select %51, %52, %53 : vector<16x16xi1>, vector<16x16xf32>
      %55 = arith.addf %44, %54 : vector<16x16xf32>
      %c-5_i32 = arith.constant -5 : i32
      %56 = vector.broadcast %c-5_i32 : i32 to vector<16x16xi32>
      %57 = arith.addi %40, %56 : vector<16x16xi32>
      %c0_i32_7 = arith.constant 0 : i32
      %c15_i32_8 = arith.constant 15 : i32
      %58 = vector.broadcast %c0_i32_7 : i32 to vector<16x16xi32>
      %59 = arith.maxsi %58, %57 : vector<16x16xi32>
      %60 = vector.broadcast %c15_i32_8 : i32 to vector<16x16xi32>
      %61 = arith.minsi %60, %59 : vector<16x16xi32>
      %62 = arith.cmpi eq, %43, %61 : vector<16x16xi32>
      %cst_9 = arith.constant 0.000000e+00 : f32
      %63 = vector.broadcast %15 : f32 to vector<16x16xf32>
      %64 = vector.broadcast %cst_9 : f32 to vector<16x16xf32>
      %65 = arith.select %62, %63, %64 : vector<16x16xi1>, vector<16x16xf32>
      %66 = arith.addf %55, %65 : vector<16x16xf32>
      %c-4_i32 = arith.constant -4 : i32
      %67 = vector.broadcast %c-4_i32 : i32 to vector<16x16xi32>
      %68 = arith.addi %40, %67 : vector<16x16xi32>
      %c0_i32_10 = arith.constant 0 : i32
      %c15_i32_11 = arith.constant 15 : i32
      %69 = vector.broadcast %c0_i32_10 : i32 to vector<16x16xi32>
      %70 = arith.maxsi %69, %68 : vector<16x16xi32>
      %71 = vector.broadcast %c15_i32_11 : i32 to vector<16x16xi32>
      %72 = arith.minsi %71, %70 : vector<16x16xi32>
      %73 = arith.cmpi eq, %43, %72 : vector<16x16xi32>
      %cst_12 = arith.constant 0.000000e+00 : f32
      %74 = vector.broadcast %17 : f32 to vector<16x16xf32>
      %75 = vector.broadcast %cst_12 : f32 to vector<16x16xf32>
      %76 = arith.select %73, %74, %75 : vector<16x16xi1>, vector<16x16xf32>
      %77 = arith.addf %66, %76 : vector<16x16xf32>
      %c-3_i32 = arith.constant -3 : i32
      %78 = vector.broadcast %c-3_i32 : i32 to vector<16x16xi32>
      %79 = arith.addi %40, %78 : vector<16x16xi32>
      %c0_i32_13 = arith.constant 0 : i32
      %c15_i32_14 = arith.constant 15 : i32
      %80 = vector.broadcast %c0_i32_13 : i32 to vector<16x16xi32>
      %81 = arith.maxsi %80, %79 : vector<16x16xi32>
      %82 = vector.broadcast %c15_i32_14 : i32 to vector<16x16xi32>
      %83 = arith.minsi %82, %81 : vector<16x16xi32>
      %84 = arith.cmpi eq, %43, %83 : vector<16x16xi32>
      %cst_15 = arith.constant 0.000000e+00 : f32
      %85 = vector.broadcast %19 : f32 to vector<16x16xf32>
      %86 = vector.broadcast %cst_15 : f32 to vector<16x16xf32>
      %87 = arith.select %84, %85, %86 : vector<16x16xi1>, vector<16x16xf32>
      %88 = arith.addf %77, %87 : vector<16x16xf32>
      %c-2_i32 = arith.constant -2 : i32
      %89 = vector.broadcast %c-2_i32 : i32 to vector<16x16xi32>
      %90 = arith.addi %40, %89 : vector<16x16xi32>
      %c0_i32_16 = arith.constant 0 : i32
      %c15_i32_17 = arith.constant 15 : i32
      %91 = vector.broadcast %c0_i32_16 : i32 to vector<16x16xi32>
      %92 = arith.maxsi %91, %90 : vector<16x16xi32>
      %93 = vector.broadcast %c15_i32_17 : i32 to vector<16x16xi32>
      %94 = arith.minsi %93, %92 : vector<16x16xi32>
      %95 = arith.cmpi eq, %43, %94 : vector<16x16xi32>
      %cst_18 = arith.constant 0.000000e+00 : f32
      %96 = vector.broadcast %21 : f32 to vector<16x16xf32>
      %97 = vector.broadcast %cst_18 : f32 to vector<16x16xf32>
      %98 = arith.select %95, %96, %97 : vector<16x16xi1>, vector<16x16xf32>
      %99 = arith.addf %88, %98 : vector<16x16xf32>
      %c-1_i32 = arith.constant -1 : i32
      %100 = vector.broadcast %c-1_i32 : i32 to vector<16x16xi32>
      %101 = arith.addi %40, %100 : vector<16x16xi32>
      %c0_i32_19 = arith.constant 0 : i32
      %c15_i32_20 = arith.constant 15 : i32
      %102 = vector.broadcast %c0_i32_19 : i32 to vector<16x16xi32>
      %103 = arith.maxsi %102, %101 : vector<16x16xi32>
      %104 = vector.broadcast %c15_i32_20 : i32 to vector<16x16xi32>
      %105 = arith.minsi %104, %103 : vector<16x16xi32>
      %106 = arith.cmpi eq, %43, %105 : vector<16x16xi32>
      %cst_21 = arith.constant 0.000000e+00 : f32
      %107 = vector.broadcast %23 : f32 to vector<16x16xf32>
      %108 = vector.broadcast %cst_21 : f32 to vector<16x16xf32>
      %109 = arith.select %106, %107, %108 : vector<16x16xi1>, vector<16x16xf32>
      %110 = arith.addf %99, %109 : vector<16x16xf32>
      %c0_i32_22 = arith.constant 0 : i32
      %111 = vector.broadcast %c0_i32_22 : i32 to vector<16x16xi32>
      %112 = arith.addi %40, %111 : vector<16x16xi32>
      %c0_i32_23 = arith.constant 0 : i32
      %c15_i32_24 = arith.constant 15 : i32
      %113 = vector.broadcast %c0_i32_23 : i32 to vector<16x16xi32>
      %114 = arith.maxsi %113, %112 : vector<16x16xi32>
      %115 = vector.broadcast %c15_i32_24 : i32 to vector<16x16xi32>
      %116 = arith.minsi %115, %114 : vector<16x16xi32>
      %117 = arith.cmpi eq, %43, %116 : vector<16x16xi32>
      %cst_25 = arith.constant 0.000000e+00 : f32
      %118 = vector.broadcast %25 : f32 to vector<16x16xf32>
      %119 = vector.broadcast %cst_25 : f32 to vector<16x16xf32>
      %120 = arith.select %117, %118, %119 : vector<16x16xi1>, vector<16x16xf32>
      %121 = arith.addf %110, %120 : vector<16x16xf32>
      %c1_i32 = arith.constant 1 : i32
      %122 = vector.broadcast %c1_i32 : i32 to vector<16x16xi32>
      %123 = arith.addi %40, %122 : vector<16x16xi32>
      %c0_i32_26 = arith.constant 0 : i32
      %c15_i32_27 = arith.constant 15 : i32
      %124 = vector.broadcast %c0_i32_26 : i32 to vector<16x16xi32>
      %125 = arith.maxsi %124, %123 : vector<16x16xi32>
      %126 = vector.broadcast %c15_i32_27 : i32 to vector<16x16xi32>
      %127 = arith.minsi %126, %125 : vector<16x16xi32>
      %128 = arith.cmpi eq, %43, %127 : vector<16x16xi32>
      %cst_28 = arith.constant 0.000000e+00 : f32
      %129 = vector.broadcast %27 : f32 to vector<16x16xf32>
      %130 = vector.broadcast %cst_28 : f32 to vector<16x16xf32>
      %131 = arith.select %128, %129, %130 : vector<16x16xi1>, vector<16x16xf32>
      %132 = arith.addf %121, %131 : vector<16x16xf32>
      %c2_i32 = arith.constant 2 : i32
      %133 = vector.broadcast %c2_i32 : i32 to vector<16x16xi32>
      %134 = arith.addi %40, %133 : vector<16x16xi32>
      %c0_i32_29 = arith.constant 0 : i32
      %c15_i32_30 = arith.constant 15 : i32
      %135 = vector.broadcast %c0_i32_29 : i32 to vector<16x16xi32>
      %136 = arith.maxsi %135, %134 : vector<16x16xi32>
      %137 = vector.broadcast %c15_i32_30 : i32 to vector<16x16xi32>
      %138 = arith.minsi %137, %136 : vector<16x16xi32>
      %139 = arith.cmpi eq, %43, %138 : vector<16x16xi32>
      %cst_31 = arith.constant 0.000000e+00 : f32
      %140 = vector.broadcast %29 : f32 to vector<16x16xf32>
      %141 = vector.broadcast %cst_31 : f32 to vector<16x16xf32>
      %142 = arith.select %139, %140, %141 : vector<16x16xi1>, vector<16x16xf32>
      %143 = arith.addf %132, %142 : vector<16x16xf32>
      %c3_i32 = arith.constant 3 : i32
      %144 = vector.broadcast %c3_i32 : i32 to vector<16x16xi32>
      %145 = arith.addi %40, %144 : vector<16x16xi32>
      %c0_i32_32 = arith.constant 0 : i32
      %c15_i32_33 = arith.constant 15 : i32
      %146 = vector.broadcast %c0_i32_32 : i32 to vector<16x16xi32>
      %147 = arith.maxsi %146, %145 : vector<16x16xi32>
      %148 = vector.broadcast %c15_i32_33 : i32 to vector<16x16xi32>
      %149 = arith.minsi %148, %147 : vector<16x16xi32>
      %150 = arith.cmpi eq, %43, %149 : vector<16x16xi32>
      %cst_34 = arith.constant 0.000000e+00 : f32
      %151 = vector.broadcast %31 : f32 to vector<16x16xf32>
      %152 = vector.broadcast %cst_34 : f32 to vector<16x16xf32>
      %153 = arith.select %150, %151, %152 : vector<16x16xi1>, vector<16x16xf32>
      %154 = arith.addf %143, %153 : vector<16x16xf32>
      %c4_i32 = arith.constant 4 : i32
      %155 = vector.broadcast %c4_i32 : i32 to vector<16x16xi32>
      %156 = arith.addi %40, %155 : vector<16x16xi32>
      %c0_i32_35 = arith.constant 0 : i32
      %c15_i32_36 = arith.constant 15 : i32
      %157 = vector.broadcast %c0_i32_35 : i32 to vector<16x16xi32>
      %158 = arith.maxsi %157, %156 : vector<16x16xi32>
      %159 = vector.broadcast %c15_i32_36 : i32 to vector<16x16xi32>
      %160 = arith.minsi %159, %158 : vector<16x16xi32>
      %161 = arith.cmpi eq, %43, %160 : vector<16x16xi32>
      %cst_37 = arith.constant 0.000000e+00 : f32
      %162 = vector.broadcast %33 : f32 to vector<16x16xf32>
      %163 = vector.broadcast %cst_37 : f32 to vector<16x16xf32>
      %164 = arith.select %161, %162, %163 : vector<16x16xi1>, vector<16x16xf32>
      %165 = arith.addf %154, %164 : vector<16x16xf32>
      %c5_i32 = arith.constant 5 : i32
      %166 = vector.broadcast %c5_i32 : i32 to vector<16x16xi32>
      %167 = arith.addi %40, %166 : vector<16x16xi32>
      %c0_i32_38 = arith.constant 0 : i32
      %c15_i32_39 = arith.constant 15 : i32
      %168 = vector.broadcast %c0_i32_38 : i32 to vector<16x16xi32>
      %169 = arith.maxsi %168, %167 : vector<16x16xi32>
      %170 = vector.broadcast %c15_i32_39 : i32 to vector<16x16xi32>
      %171 = arith.minsi %170, %169 : vector<16x16xi32>
      %172 = arith.cmpi eq, %43, %171 : vector<16x16xi32>
      %cst_40 = arith.constant 0.000000e+00 : f32
      %173 = vector.broadcast %35 : f32 to vector<16x16xf32>
      %174 = vector.broadcast %cst_40 : f32 to vector<16x16xf32>
      %175 = arith.select %172, %173, %174 : vector<16x16xi1>, vector<16x16xf32>
      %176 = arith.addf %165, %175 : vector<16x16xf32>
      %c6_i32 = arith.constant 6 : i32
      %177 = vector.broadcast %c6_i32 : i32 to vector<16x16xi32>
      %178 = arith.addi %40, %177 : vector<16x16xi32>
      %c0_i32_41 = arith.constant 0 : i32
      %c15_i32_42 = arith.constant 15 : i32
      %179 = vector.broadcast %c0_i32_41 : i32 to vector<16x16xi32>
      %180 = arith.maxsi %179, %178 : vector<16x16xi32>
      %181 = vector.broadcast %c15_i32_42 : i32 to vector<16x16xi32>
      %182 = arith.minsi %181, %180 : vector<16x16xi32>
      %183 = arith.cmpi eq, %43, %182 : vector<16x16xi32>
      %cst_43 = arith.constant 0.000000e+00 : f32
      %184 = vector.broadcast %37 : f32 to vector<16x16xf32>
      %185 = vector.broadcast %cst_43 : f32 to vector<16x16xf32>
      %186 = arith.select %183, %184, %185 : vector<16x16xi1>, vector<16x16xf32>
      %187 = arith.addf %176, %186 : vector<16x16xf32>
      %188 = arith.truncf %187 : vector<16x16xf32> to vector<16x16xbf16>
      %189 = tpu.iota {dimensions = array<i32: 0>} : vector<16x16xi32>
      %c0_i32_44 = arith.constant 0 : i32
      %190 = vector.broadcast %c0_i32_44 : i32 to vector<16x16xi32>
      %191 = arith.addi %189, %190 : vector<16x16xi32>
      %192 = tpu.iota {dimensions = array<i32: 1>} : vector<16x16xi32>
      %193 = vector.broadcast %1 : i32 to vector<16x16xi32>
      %194 = arith.addi %192, %193 : vector<16x16xi32>
      %cst_45 = arith.constant 0.000000e+00 : f32
      %195 = vector.broadcast %cst_45 : f32 to vector<16x16xf32>
      %c-6_i32_46 = arith.constant -6 : i32
      %196 = vector.broadcast %c-6_i32_46 : i32 to vector<16x16xi32>
      %197 = arith.addi %194, %196 : vector<16x16xi32>
      %c0_i32_47 = arith.constant 0 : i32
      %c15_i32_48 = arith.constant 15 : i32
      %198 = vector.broadcast %c0_i32_47 : i32 to vector<16x16xi32>
      %199 = arith.maxsi %198, %197 : vector<16x16xi32>
      %200 = vector.broadcast %c15_i32_48 : i32 to vector<16x16xi32>
      %201 = arith.minsi %200, %199 : vector<16x16xi32>
      %202 = arith.cmpi eq, %191, %201 : vector<16x16xi32>
      %cst_49 = arith.constant 0.000000e+00 : f32
      %203 = vector.broadcast %13 : f32 to vector<16x16xf32>
      %204 = vector.broadcast %cst_49 : f32 to vector<16x16xf32>
      %205 = arith.select %202, %203, %204 : vector<16x16xi1>, vector<16x16xf32>
      %206 = arith.addf %195, %205 : vector<16x16xf32>
      %c-5_i32_50 = arith.constant -5 : i32
      %207 = vector.broadcast %c-5_i32_50 : i32 to vector<16x16xi32>
      %208 = arith.addi %194, %207 : vector<16x16xi32>
      %c0_i32_51 = arith.constant 0 : i32
      %c15_i32_52 = arith.constant 15 : i32
      %209 = vector.broadcast %c0_i32_51 : i32 to vector<16x16xi32>
      %210 = arith.maxsi %209, %208 : vector<16x16xi32>
      %211 = vector.broadcast %c15_i32_52 : i32 to vector<16x16xi32>
      %212 = arith.minsi %211, %210 : vector<16x16xi32>
      %213 = arith.cmpi eq, %191, %212 : vector<16x16xi32>
      %cst_53 = arith.constant 0.000000e+00 : f32
      %214 = vector.broadcast %15 : f32 to vector<16x16xf32>
      %215 = vector.broadcast %cst_53 : f32 to vector<16x16xf32>
      %216 = arith.select %213, %214, %215 : vector<16x16xi1>, vector<16x16xf32>
      %217 = arith.addf %206, %216 : vector<16x16xf32>
      %c-4_i32_54 = arith.constant -4 : i32
      %218 = vector.broadcast %c-4_i32_54 : i32 to vector<16x16xi32>
      %219 = arith.addi %194, %218 : vector<16x16xi32>
      %c0_i32_55 = arith.constant 0 : i32
      %c15_i32_56 = arith.constant 15 : i32
      %220 = vector.broadcast %c0_i32_55 : i32 to vector<16x16xi32>
      %221 = arith.maxsi %220, %219 : vector<16x16xi32>
      %222 = vector.broadcast %c15_i32_56 : i32 to vector<16x16xi32>
      %223 = arith.minsi %222, %221 : vector<16x16xi32>
      %224 = arith.cmpi eq, %191, %223 : vector<16x16xi32>
      %cst_57 = arith.constant 0.000000e+00 : f32
      %225 = vector.broadcast %17 : f32 to vector<16x16xf32>
      %226 = vector.broadcast %cst_57 : f32 to vector<16x16xf32>
      %227 = arith.select %224, %225, %226 : vector<16x16xi1>, vector<16x16xf32>
      %228 = arith.addf %217, %227 : vector<16x16xf32>
      %c-3_i32_58 = arith.constant -3 : i32
      %229 = vector.broadcast %c-3_i32_58 : i32 to vector<16x16xi32>
      %230 = arith.addi %194, %229 : vector<16x16xi32>
      %c0_i32_59 = arith.constant 0 : i32
      %c15_i32_60 = arith.constant 15 : i32
      %231 = vector.broadcast %c0_i32_59 : i32 to vector<16x16xi32>
      %232 = arith.maxsi %231, %230 : vector<16x16xi32>
      %233 = vector.broadcast %c15_i32_60 : i32 to vector<16x16xi32>
      %234 = arith.minsi %233, %232 : vector<16x16xi32>
      %235 = arith.cmpi eq, %191, %234 : vector<16x16xi32>
      %cst_61 = arith.constant 0.000000e+00 : f32
      %236 = vector.broadcast %19 : f32 to vector<16x16xf32>
      %237 = vector.broadcast %cst_61 : f32 to vector<16x16xf32>
      %238 = arith.select %235, %236, %237 : vector<16x16xi1>, vector<16x16xf32>
      %239 = arith.addf %228, %238 : vector<16x16xf32>
      %c-2_i32_62 = arith.constant -2 : i32
      %240 = vector.broadcast %c-2_i32_62 : i32 to vector<16x16xi32>
      %241 = arith.addi %194, %240 : vector<16x16xi32>
      %c0_i32_63 = arith.constant 0 : i32
      %c15_i32_64 = arith.constant 15 : i32
      %242 = vector.broadcast %c0_i32_63 : i32 to vector<16x16xi32>
      %243 = arith.maxsi %242, %241 : vector<16x16xi32>
      %244 = vector.broadcast %c15_i32_64 : i32 to vector<16x16xi32>
      %245 = arith.minsi %244, %243 : vector<16x16xi32>
      %246 = arith.cmpi eq, %191, %245 : vector<16x16xi32>
      %cst_65 = arith.constant 0.000000e+00 : f32
      %247 = vector.broadcast %21 : f32 to vector<16x16xf32>
      %248 = vector.broadcast %cst_65 : f32 to vector<16x16xf32>
      %249 = arith.select %246, %247, %248 : vector<16x16xi1>, vector<16x16xf32>
      %250 = arith.addf %239, %249 : vector<16x16xf32>
      %c-1_i32_66 = arith.constant -1 : i32
      %251 = vector.broadcast %c-1_i32_66 : i32 to vector<16x16xi32>
      %252 = arith.addi %194, %251 : vector<16x16xi32>
      %c0_i32_67 = arith.constant 0 : i32
      %c15_i32_68 = arith.constant 15 : i32
      %253 = vector.broadcast %c0_i32_67 : i32 to vector<16x16xi32>
      %254 = arith.maxsi %253, %252 : vector<16x16xi32>
      %255 = vector.broadcast %c15_i32_68 : i32 to vector<16x16xi32>
      %256 = arith.minsi %255, %254 : vector<16x16xi32>
      %257 = arith.cmpi eq, %191, %256 : vector<16x16xi32>
      %cst_69 = arith.constant 0.000000e+00 : f32
      %258 = vector.broadcast %23 : f32 to vector<16x16xf32>
      %259 = vector.broadcast %cst_69 : f32 to vector<16x16xf32>
      %260 = arith.select %257, %258, %259 : vector<16x16xi1>, vector<16x16xf32>
      %261 = arith.addf %250, %260 : vector<16x16xf32>
      %c0_i32_70 = arith.constant 0 : i32
      %262 = vector.broadcast %c0_i32_70 : i32 to vector<16x16xi32>
      %263 = arith.addi %194, %262 : vector<16x16xi32>
      %c0_i32_71 = arith.constant 0 : i32
      %c15_i32_72 = arith.constant 15 : i32
      %264 = vector.broadcast %c0_i32_71 : i32 to vector<16x16xi32>
      %265 = arith.maxsi %264, %263 : vector<16x16xi32>
      %266 = vector.broadcast %c15_i32_72 : i32 to vector<16x16xi32>
      %267 = arith.minsi %266, %265 : vector<16x16xi32>
      %268 = arith.cmpi eq, %191, %267 : vector<16x16xi32>
      %cst_73 = arith.constant 0.000000e+00 : f32
      %269 = vector.broadcast %25 : f32 to vector<16x16xf32>
      %270 = vector.broadcast %cst_73 : f32 to vector<16x16xf32>
      %271 = arith.select %268, %269, %270 : vector<16x16xi1>, vector<16x16xf32>
      %272 = arith.addf %261, %271 : vector<16x16xf32>
      %c1_i32_74 = arith.constant 1 : i32
      %273 = vector.broadcast %c1_i32_74 : i32 to vector<16x16xi32>
      %274 = arith.addi %194, %273 : vector<16x16xi32>
      %c0_i32_75 = arith.constant 0 : i32
      %c15_i32_76 = arith.constant 15 : i32
      %275 = vector.broadcast %c0_i32_75 : i32 to vector<16x16xi32>
      %276 = arith.maxsi %275, %274 : vector<16x16xi32>
      %277 = vector.broadcast %c15_i32_76 : i32 to vector<16x16xi32>
      %278 = arith.minsi %277, %276 : vector<16x16xi32>
      %279 = arith.cmpi eq, %191, %278 : vector<16x16xi32>
      %cst_77 = arith.constant 0.000000e+00 : f32
      %280 = vector.broadcast %27 : f32 to vector<16x16xf32>
      %281 = vector.broadcast %cst_77 : f32 to vector<16x16xf32>
      %282 = arith.select %279, %280, %281 : vector<16x16xi1>, vector<16x16xf32>
      %283 = arith.addf %272, %282 : vector<16x16xf32>
      %c2_i32_78 = arith.constant 2 : i32
      %284 = vector.broadcast %c2_i32_78 : i32 to vector<16x16xi32>
      %285 = arith.addi %194, %284 : vector<16x16xi32>
      %c0_i32_79 = arith.constant 0 : i32
      %c15_i32_80 = arith.constant 15 : i32
      %286 = vector.broadcast %c0_i32_79 : i32 to vector<16x16xi32>
      %287 = arith.maxsi %286, %285 : vector<16x16xi32>
      %288 = vector.broadcast %c15_i32_80 : i32 to vector<16x16xi32>
      %289 = arith.minsi %288, %287 : vector<16x16xi32>
      %290 = arith.cmpi eq, %191, %289 : vector<16x16xi32>
      %cst_81 = arith.constant 0.000000e+00 : f32
      %291 = vector.broadcast %29 : f32 to vector<16x16xf32>
      %292 = vector.broadcast %cst_81 : f32 to vector<16x16xf32>
      %293 = arith.select %290, %291, %292 : vector<16x16xi1>, vector<16x16xf32>
      %294 = arith.addf %283, %293 : vector<16x16xf32>
      %c3_i32_82 = arith.constant 3 : i32
      %295 = vector.broadcast %c3_i32_82 : i32 to vector<16x16xi32>
      %296 = arith.addi %194, %295 : vector<16x16xi32>
      %c0_i32_83 = arith.constant 0 : i32
      %c15_i32_84 = arith.constant 15 : i32
      %297 = vector.broadcast %c0_i32_83 : i32 to vector<16x16xi32>
      %298 = arith.maxsi %297, %296 : vector<16x16xi32>
      %299 = vector.broadcast %c15_i32_84 : i32 to vector<16x16xi32>
      %300 = arith.minsi %299, %298 : vector<16x16xi32>
      %301 = arith.cmpi eq, %191, %300 : vector<16x16xi32>
      %cst_85 = arith.constant 0.000000e+00 : f32
      %302 = vector.broadcast %31 : f32 to vector<16x16xf32>
      %303 = vector.broadcast %cst_85 : f32 to vector<16x16xf32>
      %304 = arith.select %301, %302, %303 : vector<16x16xi1>, vector<16x16xf32>
      %305 = arith.addf %294, %304 : vector<16x16xf32>
      %c4_i32_86 = arith.constant 4 : i32
      %306 = vector.broadcast %c4_i32_86 : i32 to vector<16x16xi32>
      %307 = arith.addi %194, %306 : vector<16x16xi32>
      %c0_i32_87 = arith.constant 0 : i32
      %c15_i32_88 = arith.constant 15 : i32
      %308 = vector.broadcast %c0_i32_87 : i32 to vector<16x16xi32>
      %309 = arith.maxsi %308, %307 : vector<16x16xi32>
      %310 = vector.broadcast %c15_i32_88 : i32 to vector<16x16xi32>
      %311 = arith.minsi %310, %309 : vector<16x16xi32>
      %312 = arith.cmpi eq, %191, %311 : vector<16x16xi32>
      %cst_89 = arith.constant 0.000000e+00 : f32
      %313 = vector.broadcast %33 : f32 to vector<16x16xf32>
      %314 = vector.broadcast %cst_89 : f32 to vector<16x16xf32>
      %315 = arith.select %312, %313, %314 : vector<16x16xi1>, vector<16x16xf32>
      %316 = arith.addf %305, %315 : vector<16x16xf32>
      %c5_i32_90 = arith.constant 5 : i32
      %317 = vector.broadcast %c5_i32_90 : i32 to vector<16x16xi32>
      %318 = arith.addi %194, %317 : vector<16x16xi32>
      %c0_i32_91 = arith.constant 0 : i32
      %c15_i32_92 = arith.constant 15 : i32
      %319 = vector.broadcast %c0_i32_91 : i32 to vector<16x16xi32>
      %320 = arith.maxsi %319, %318 : vector<16x16xi32>
      %321 = vector.broadcast %c15_i32_92 : i32 to vector<16x16xi32>
      %322 = arith.minsi %321, %320 : vector<16x16xi32>
      %323 = arith.cmpi eq, %191, %322 : vector<16x16xi32>
      %cst_93 = arith.constant 0.000000e+00 : f32
      %324 = vector.broadcast %35 : f32 to vector<16x16xf32>
      %325 = vector.broadcast %cst_93 : f32 to vector<16x16xf32>
      %326 = arith.select %323, %324, %325 : vector<16x16xi1>, vector<16x16xf32>
      %327 = arith.addf %316, %326 : vector<16x16xf32>
      %c6_i32_94 = arith.constant 6 : i32
      %328 = vector.broadcast %c6_i32_94 : i32 to vector<16x16xi32>
      %329 = arith.addi %194, %328 : vector<16x16xi32>
      %c0_i32_95 = arith.constant 0 : i32
      %c15_i32_96 = arith.constant 15 : i32
      %330 = vector.broadcast %c0_i32_95 : i32 to vector<16x16xi32>
      %331 = arith.maxsi %330, %329 : vector<16x16xi32>
      %332 = vector.broadcast %c15_i32_96 : i32 to vector<16x16xi32>
      %333 = arith.minsi %332, %331 : vector<16x16xi32>
      %334 = arith.cmpi eq, %191, %333 : vector<16x16xi32>
      %cst_97 = arith.constant 0.000000e+00 : f32
      %335 = vector.broadcast %37 : f32 to vector<16x16xf32>
      %336 = vector.broadcast %cst_97 : f32 to vector<16x16xf32>
      %337 = arith.select %334, %335, %336 : vector<16x16xi1>, vector<16x16xf32>
      %338 = arith.addf %327, %337 : vector<16x16xf32>
      %339 = arith.truncf %338 : vector<16x16xf32> to vector<16x16xbf16>
      %c0_98 = arith.constant 0 : index
      %c0_99 = arith.constant 0 : index
      %c0_100 = arith.constant 0 : index
      %c0_101 = arith.constant 0 : index
      %340 = vector.load %arg6[%c0_98, %c0_99, %c0_100, %c0_101] : memref<1x1x16x16xf32, #tpu.memory_space<vmem>>, vector<1x1x16x16xf32>
      %341 = vector.shape_cast %340 : vector<1x1x16x16xf32> to vector<16x16xf32>
      %342 = arith.truncf %341 : vector<16x16xf32> to vector<16x16xbf16>
      %cst_102 = arith.constant dense<0.000000e+00> : vector<16x16xf32>
      %343 = tpu.matmul %188, %342, %cst_102 {dimension_numbers = #tpu.dot_dimension_numbers<[1], [0], [0], [1], [0, 0, 1, 1], [], []>} : vector<16x16xbf16>, vector<16x16xbf16>, vector<16x16xf32> -> vector<16x16xf32>
      %344 = arith.truncf %343 : vector<16x16xf32> to vector<16x16xbf16>
      %cst_103 = arith.constant dense<0.000000e+00> : vector<16x16xf32>
      %345 = tpu.matmul %344, %339, %cst_103 {dimension_numbers = #tpu.dot_dimension_numbers<[1], [0], [0], [1], [0, 0, 1, 1], [], []>} : vector<16x16xbf16>, vector<16x16xbf16>, vector<16x16xf32> -> vector<16x16xf32>
      %c0_104 = arith.constant 0 : index
      %c0_105 = arith.constant 0 : index
      %c0_106 = arith.constant 0 : index
      %c0_107 = arith.constant 0 : index
      %346 = vector.load %arg7[%c0_104, %c0_105, %c0_106, %c0_107] : memref<1x1x16x16xf32, #tpu.memory_space<vmem>>, vector<1x1x16x16xf32>
      %347 = vector.shape_cast %346 : vector<1x1x16x16xf32> to vector<16x16xf32>
      %348 = vector.shape_cast %345 : vector<16x16xf32> to vector<1x1x16x16xf32>
      tpu.vector_store %arg7[%c0_104, %c0_105, %c0_106, %c0_107], %348 {strides = array<i32>} : memref<1x1x16x16xf32, #tpu.memory_space<vmem>>, vector<1x1x16x16xf32>,
    } else {
    }
    %7 = arith.index_cast %arg0 : i32 to index
    %8 = memref.load %arg4[%7] : memref<2xi32, #tpu.memory_space<smem>>
    %c0_i32_2 = arith.constant 0 : i32
    %9 = arith.cmpi eq, %8, %c0_i32_2 : i32
    %10 = arith.extui %9 : i1 to i32
    %c0_i32_3 = arith.constant 0 : i32
    %11 = arith.cmpi ne, %10, %c0_i32_3 : i32
    scf.if %11 {
      %c0 = arith.constant 0 : index
      %c0_4 = arith.constant 0 : index
      %c0_5 = arith.constant 0 : index
      %c0_6 = arith.constant 0 : index
      %12 = vector.load %arg6[%c0, %c0_4, %c0_5, %c0_6] : memref<1x1x16x16xf32, #tpu.memory_space<vmem>>, vector<1x1x16x16xf32>
      %13 = vector.shape_cast %12 : vector<1x1x16x16xf32> to vector<16x16xf32>
      %c0_7 = arith.constant 0 : index
      %c0_8 = arith.constant 0 : index
      %c0_9 = arith.constant 0 : index
      %c0_10 = arith.constant 0 : index
      %14 = vector.load %arg7[%c0_7, %c0_8, %c0_9, %c0_10] : memref<1x1x16x16xf32, #tpu.memory_space<vmem>>, vector<1x1x16x16xf32>
      %15 = vector.shape_cast %14 : vector<1x1x16x16xf32> to vector<16x16xf32>
      %16 = vector.shape_cast %13 : vector<16x16xf32> to vector<1x1x16x16xf32>
      tpu.vector_store %arg7[%c0_7, %c0_8, %c0_9, %c0_10], %16 {strides = array<i32>} : memref<1x1x16x16xf32, #tpu.memory_space<vmem>>, vector<1x1x16x16xf32>,
    } else {
    }
    return
  }
  func.func @transform_0(%arg0: i32, %arg1: i32, %arg2: i32, %arg3: i32) -> i32 {
    %c0_i32 = arith.constant 0 : i32
    %c0_i32_0 = arith.constant 0 : i32
    return %c0_i32 : i32
  }
  func.func @transform_1(%arg0: i32, %arg1: i32, %arg2: i32, %arg3: i32) -> (i32, i32) {
    %c0_i32 = arith.constant 0 : i32
    %c0_i32_0 = arith.constant 0 : i32
    %c0_i32_1 = arith.constant 0 : i32
    return %c0_i32, %c0_i32_0 : i32, i32
  }
  func.func @transform_2(%arg0: i32, %arg1: i32, %arg2: i32, %arg3: i32) -> (i32, i32, i32, i32) {
    %c0_i32 = arith.constant 0 : i32
    %c0_i32_0 = arith.constant 0 : i32
    %c0_i32_1 = arith.constant 0 : i32
    return %arg0, %arg1, %c0_i32, %c0_i32_0 : i32, i32, i32, i32
  }
  func.func @transform_3(%arg0: i32, %arg1: i32, %arg2: i32, %arg3: i32) -> (i32, i32, i32, i32) {
    %c0_i32 = arith.constant 0 : i32
    return %arg0, %arg1, %arg2, %arg3 : i32, i32, i32, i32
  }
}

</mosaic_0001>

<bundles_post_ra>
// kernel: tpu_custom_call.1
= control target key start
LH: loop header
LB: loop body
LE: loop exit
PB: predicated region body
PF: predicated region fallthrough
CT: control target
= control target key end

     0   :  { %s1751_s0 = inlined_call_operand.hbm [shape: s32[2], index: 0, kind: input, shape index: {}]   ;;  %s1752_s1 = inlined_call_operand.hbm [shape: f32[2,13], index: 1, kind: input, shape index: {}]   ;;  %s1753_s2 = inlined_call_operand.hbm [shape: f32[2,4,16,16], index: 2, kind: input, shape index: {}]   ;;  %s1754_s3 = inlined_call_operand.hbm [shape: f32[2,4,16,16], index: 3, kind: output, shape index: {}]  }
   0x1   :  { %1762 = sst [smem:[#allocation17_spill]] %s1751_s0 }
   0x2   :  { %1763 = sst [smem:[#allocation18_spill]] %s1752_s1 }
   0x3   :  { %8 = vsyncpa [#allocation5], 0 }
   0x4   :  { %9 = vsyncpa [#allocation7], 0 }
   0x5   :  { %10 = vsyncpa [#allocation3], 0 }
   0x6   :  { %12 = vsyncpa [#allocation3 + $0x1], 0 }
   0x7   :  { %13 = vsyncpa [#allocation4], 0 }
   0x8   :  { %15 = vsyncpa [#allocation4 + $0x1], 0  ;;  %s1242_s12 = smov 0   ;;  %s1244_s13 = smov 0  }
   0x9   :  { %s1246_s14 = smov 0   ;;  %s1248_s15 = smov 0  }
   0xa   :  { %s1250_s16 = smov 0   ;;  %s1252_s17 = smov 0  }
   0xb   :  { %s1254_s18 = smov 0   ;;  %s1256_s19 = smov 0  }
   0xc LB: > { %1764 = sst [smem:[#allocation14_spill]] %s1202_s17  ;;  %s901_s20 = sadd.s32 4294967295, %s1210_s19   ;;  %s1210_s19 = sphi %s1256_s19, %s21_s19   ;;  %s1206_s18 = sphi %s1254_s18, %s1791_s18   ;;  %s1202_s17 = sphi %s1252_s17, %s1790_s17   ;;  %s1198_s16 = sphi %s1250_s16, %s1789_s16   ;;  %s1194_s15 = sphi %s1248_s15, %s1784_s15   ;;  %s1190_s14 = sphi %s1246_s14, %s1788_s14   ;;  %s1186_s13 = sphi %s1244_s13, %s1787_s13   ;;  %s1182_s12 = sphi %s1242_s12, %s1786_s12  }
   0xd   : > { %s902_s21 = sadd.s32 4294967294, %s1210_s19   ;;  %p105_p0 = scmp.ne.s32.totalorder %s1190_s14, %s1186_s13 }
   0xe   : > { %p106_p1 = scmp.eq.s32.totalorder %s1210_s19, 0  ;;  %p111_p2 = scmp.ne.s32.totalorder %s1186_s13, %s1182_s12 }
   0xf   : > { %p1290_p3 = scmp.eq.s32.totalorder %s901_s20, 0  ;;  %p141_p4 = scmp.eq.s32.totalorder %s901_s20, 7 }
  0x10   : > { %p107_p5 = por %p106_p1, %p105_p0  ;;  %p147_p6 = scmp.eq.s32.totalorder %s902_s21, 7 }
  0x11   : > { %s1765_s23 = scalar_select %p1290_p3, 1, 0 }
  0x12   : > { %p1296_p7 = por %p1290_p3, %p111_p2  ;;  %p1300_p8 = por %p141_p4, %p105_p0 }
  0x13   : > { %p1304_p9 = por %p147_p6, %p111_p2  ;;  %p903_p10 = scmp.ge.s32.totalorder %s1210_s19, 1 }
  0x14   : > { %s1766_s24 = scalar_select %p1296_p7, 1, 0 }
  0x15   : > { %s1767_s25 = scalar_select %p1300_p8, 1, 0 }
  0x16   : > { %s1768_s26 = scalar_select %p1304_p9, 1, 0 }
  0x17   : > { %p154_p11 = scmp.lt.s32.totalorder %s1210_s19, 9  ;;  %p972_p13 = scmp.lt.s32.totalorder %s1210_s19, 8 }
  0x18   : > { %1769 = sst [smem:[#allocation15_spill]] %s1768_s26  ;;  %p1772_p0 = scmp.ne.s32.totalorder %s1765_s23, 0 }
  0x19   : > { %p1310_p12 = pnand %p903_p10, %p154_p11  ;;  %p1317_p3 = pnand %p972_p13, %p107_p5 }
  0x1a   : > { %s43_s30 = sadd.s32 1, %s1202_s17  ;;  %s1775_s0 = sld [smem:[#allocation17_spill]] }
  0x1b   : > { %p955_p1 = pneg %p1310_p12  ;;  %p1328_p2 = scmp.ge.s32.totalorder %s43_s30, 4 }
  0x1d   : > { %p1323_p4 = pnand %p955_p1, %p1772_p0 }
  0x1f   : > { %p1050_p6 = pneg %p1323_p4 }
  0x20   : > { %s1048_s7 = scalar_lea.hbm %s1775_s0, 16 }
  0x21   : > { %p1049_p5 = scmp.ne.s32.totalorder %s1775_s0, %s1048_s7  ;;  %p1055_p13 = scmp.lt.u32.totalorder %s1048_s7, %s1775_s0 }
  0x23   : > { %p1051_p10 = pnand %p1050_p6, %p1049_p5 }
  0x25   : > { %p1052_p11 = pneg %p1051_p10 }
  0x27   : > { %p1057_p1 = pnand %p1055_p13, %p1052_p11 }
  0x29   : > { %1060 = shalt.err (!%p1057_p1)
}
  0x2a   : > { %s1212_s20 = smov [#allocation2]   ;;  %s1776_s1 = sld [smem:[#allocation18_spill]] }
  0x2b   : > { %958 = dma.hbm_to_smem (!%p1323_p4), %s1775_s0, 16, %s1212_s20, [#allocation5]  }
  0x30   : > { %s1061_s9 = scalar_lea.hbm %s1776_s1, 32 }
  0x31   : > { %p1062_p0 = scmp.ne.s32.totalorder %s1776_s1, %s1061_s9  ;;  %p1068_p11 = scmp.lt.u32.totalorder %s1061_s9, %s1776_s1 }
  0x33   : > { %p1064_p5 = pnand %p1062_p0, %p1050_p6 }
  0x35   : > { %p1065_p10 = pneg %p1064_p5 }
  0x37   : > { %p1070_p13 = pnand %p1068_p11, %p1065_p10 }
  0x39   : > { %1073 = shalt.err (!%p1070_p13)
}
  0x3a   : > { %s1213_s11 = smov [#allocation6]   ;;  %s1793_s30 = smov (%p1328_p2, %s43_s30), 0 }
  0x3b   : > { %961 = dma.hbm_to_smem (!%p1323_p4), %s1776_s1, 32, %s1213_s11, [#allocation7]  }
  0x3c   : > { %1777 = sst [smem:[#allocation16_spill]] %s1793_s30  ;;  %s47_s22 = sadd.s32 1, %s1206_s18 }
  0x3d   : > { %s185_s26 = sand.u32 1, %s1190_s14   ;;  %s1795_s22 = smov (!%p1328_p2, %s47_s22), %s1206_s18 }
  0x3e   : > { %s94_s29 = ssub.s32 %s1202_s17, %s1793_s30  ;;  %p49_p6 = scmp.ge.s32.totalorder %s1795_s22, 2 }
  0x3f   : > { %s907_s5 = sshll.u32 %s185_s26, 4  ;;  %s908_s6 = sshll.u32 %s1202_s17, 1 }
  0x40   : > { %s1797_s22 = smov (%p49_p6, %s1795_s22), 0  ;;  %s909_s8 = sshll.u32 %s1206_s18, 3 }
  0x41   : > { %s189_s9 = scalar_lea.vmem [#allocation8], %s907_s5  ;;  %s93_s10 = ssub.s32 %s1206_s18, %s1797_s22 }
  0x42   : > { %s198_s7 = sshll.u32 %s189_s9, 4  ;;  %s195_s11 = sadd.s32 %s909_s8, %s908_s6  ;;  %s1384_s7 = int_to_ptr.vmem [resolvable:$true] %s198_s7 }
  0x43   : > { %s95_s20 = sor.u32 %s94_s29, %s93_s10  ;;  %s910_s21 = sshll.u32 %s195_s11, 7 }
  0x44   : > { %p96_p4 = scmp.eq.s32.totalorder %s95_s20, 0  ;;  %s1382_s1 = scalar_lea.hbm %s1753_s2, %s910_s21 }
  0x45   : > { %s1778_s30 = sadd.s32 1, %s1190_s14  ;;  %s1391_s5 = scalar_lea.sflag [#allocation3], %s185_s26 }
  0x46   : > { %s1389_s17 = scalar_select %p96_p4, %s1190_s14, %s1778_s30  }
  0x47   : > { %s1074_s6 = scalar_lea.hbm %s1382_s1, 256  ;;  %p1076_p1 = pneg %p1317_p3 }
  0x48   : > { %p1075_p2 = scmp.ne.s32.totalorder %s1382_s1, %s1074_s6  ;;  %s1079_s8 = scalar_lea.hbm %s1753_s2, 2048 }
  0x49   : > { %p1080_p10 = scmp.lt.u32.totalorder %s1382_s1, %s1753_s2  ;;  %p1081_p11 = scmp.lt.u32.totalorder %s1079_s8, %s1074_s6 }
  0x4a   : > { %p1077_p0 = pnand %p1076_p1, %p1075_p2  ;;  %p1083_p6 = scmp.lt.u32.totalorder %s1074_s6, %s1382_s1 }
  0x4b   : > { %p1082_p13 = por %p1081_p11, %p1080_p10 }
  0x4c   : > { %p1078_p5 = pneg %p1077_p0 }
  0x4d   : > { %p1084_p4 = por %p1083_p6, %p1082_p13 }
  0x4f   : > { %p1085_p9 = pnand %p1084_p4, %p1078_p5 }
  0x51   : > { %1088 = shalt.err (!%p1085_p9)
}
  0x52   : > { %s1089_s30 = scalar_lea.vmem %s1384_s7, 256  ;;  %s1214_s26 = smov [#allocation8]  }
  0x53   : > { %p1090_p2 = scmp.ne.s32.totalorder %s1384_s7, %s1089_s30  ;;  %s1094_s11 = sshll.u32 %s1214_s26, 4  ;;  %s1095_s11 = int_to_ptr.vmem [resolvable:$false] %s1094_s11 }
  0x54   : > { %s1096_s20 = scalar_lea.vmem %s1095_s11, 512  ;;  %p1097_p7 = scmp.lt.s32.totalorder %s1384_s7, %s1095_s11 }
  0x55   : > { %p1092_p0 = pnand %p1090_p2, %p1076_p1  ;;  %p1098_p10 = scmp.lt.s32.totalorder %s1096_s20, %s1089_s30 }
  0x57   : > { %p1093_p8 = pneg %p1092_p0  ;;  %p1099_p11 = por %p1098_p10, %p1097_p7 }
  0x59   : > { %p1100_p13 = pnand %p1099_p11, %p1093_p8 }
  0x5b   : > { %1103 = shalt.err (!%p1100_p13)
}
  0x5c   : > { %s1215_s21 = smov 128   ;;  %s1216_s4 = smov 8  }
  0x5d   : > { %965 = dma.hbm_to_vmem [thread:$0]  (!%p1317_p3), %s1382_s1, 256, %s1384_s7, %s1391_s5, %s1215_s21, %s1215_s21, %s1216_s4  }
  0x5e   : > { %210 = sbr.rel (%p1310_p12) target bundleno = 636 (0x27c), region = 32  ;;  %p1779_p9 = scmp.ne.s32.totalorder (!%p1310_p12), %s1765_s23, 0 }
  0x65   : > { %1165 = dma.done.wait (%p1779_p9), [#allocation5], 16  }
  0x66   : > { %1167 = vsyncadd (%p1779_p9), [#allocation5], 4294967280 }
  0x67   : > { %1169 = dma.done.wait (%p1779_p9), [#allocation7], 32  }
  0x68   : > { %1171 = vsyncadd (%p1779_p9), [#allocation7], 4294967264  ;;  %s1430_s6 = sand.u32 1, %s1186_s13   ;;  %p1780_p3 = scmp.ne.s32.totalorder %s1766_s24, 0 }
  0x69   : > { %s914_s1 = sshll.u32 %s1430_s6, 4  ;;  %s221_s27 = scalar_lea.sflag [#allocation3], %s1430_s6 }
  0x6a   : > { %s1434_s28 = scalar_lea.vmem [#allocation8], %s914_s1 }
  0x6b   : > { %1173 = dma.done.wait (%p1780_p3), %s221_s27, 256  }
  0x6c   : > { %1175 = vsyncadd (%p1780_p3), %s221_s27, 4294967040 }
  0x6d   : > { %229 = sfence }
  0x6e   : > { %s252_s7 = sld [smem:[#allocation2 + %s1198_s16]]  ;;  %s1441_s23 = scalar_lea.vmem [#allocation9], %s914_s1 }
  0x74   : > { %p916_p7 = scmp.eq.s32.totalorder %s252_s7, 0 }
  0x75   : > { %v656_v0 = vld [vmem:[%s1434_s28] sm:$0xff] (!%p916_p7)  ;;  %v657_v1 = vld [vmem:[%s1434_s28 + $0x8] sm:$0xff] (!%p916_p7)  ;;  %s1446_s5 = sshll.u32 (!%p916_p7), %s1198_s16, 7  ;;  %v283_v2 = vlaneseq (!%p916_p7)  ;;  %v1217_v3 = vmov (!%p916_p7), 0.0   ;;  %vm1218_vm0 = vmmov (!%p916_p7), 0  }
  0x76   : > { %256 = sbr.rel (%p916_p7) target bundleno = 593 (0x251), region = 48  ;;  %931 = vmatprep.subr.bf16.mxu0 (!%p916_p7), %v1217_v3  ;;  %v658_v4 = vpack.c.bf16 (!%p916_p7), %v657_v1, %v656_v0  ;;  %933 = vmatprep.mubr.msk.bf16.mxu0 (!%p916_p7), %vm1218_vm0, %v1217_v3  ;;  %s258_s24 = sld [smem:[#allocation6 + %s1446_s5]] (!%p916_p7) }
  0x77   : > { %s259_s0 = sadd.s32 (!%p916_p7), 1, %s1446_s5  ;;  %s261_s8 = sadd.s32 (!%p916_p7), 2, %s1446_s5  ;;  %v1453_v5 = vshrl.u32 (!%p916_p7), %v283_v2, 7  ;;  %937 = vmatprep.subr.bf16.mxu1 (!%p916_p7), %v1217_v3  ;;  %939 = vmatprep.mubr.msk.bf16.mxu1 (!%p916_p7), %vm1218_vm0, %v1217_v3  ;;  %v1462_v7 = vand.u32 (!%p916_p7), 127, %v283_v2 }
  0x78   : > { %s1450_s29 = sld [smem:[#allocation6 + %s259_s0]] (!%p916_p7)  ;;  %932 = vmatpush3.bf16.msra.mxu0 (!%p916_p7), %v658_v4  ;;  %s263_s10 = sadd.s32 (!%p916_p7), 3, %s1446_s5 }
  0x79   : > { %s1455_s9 = sld [smem:[#allocation6 + %s261_s8]] (!%p916_p7)  ;;  %s265_s30 = sadd.s32 (!%p916_p7), 4, %s1446_s5  ;;  %v1460_v6 = vadd.s32 (!%p916_p7), 8, %v1453_v5  ;;  %v291_v8 = vadd.s32 (!%p916_p7), 4294967290, %v1453_v5  ;;  %v308_v9 = vadd.s32 (!%p916_p7), 4294967291, %v1453_v5  ;;  %v325_v10 = vadd.s32 (!%p916_p7), 4294967292, %v1453_v5 }
  0x7a   : > { %s1466_s26 = sld [smem:[#allocation6 + %s263_s10]] (!%p916_p7)  ;;  %v342_v11 = vadd.s32 (!%p916_p7), 4294967293, %v1453_v5  ;;  %v359_v12 = vadd.s32 (!%p916_p7), 4294967294, %v1453_v5  ;;  %v376_v13 = vadd.s32 (!%p916_p7), 4294967295, %v1453_v5  ;;  %s267_s20 = sadd.s32 (!%p916_p7), 5, %s1446_s5  ;;  %vm393_vm7 = vcmp.gt.s32.totalorder (!%p916_p7), %v1453_v5, 0 }
  0x7b   : > { %v292_v14 = vadd.s32 (!%p916_p7), 4294967290, %v1460_v6  ;;  %vm293_vm1 = vcmp.gt.s32.totalorder (!%p916_p7), %v291_v8, 0  ;;  %v309_v15 = vadd.s32 (!%p916_p7), 4294967291, %v1460_v6  ;;  %vm310_vm2 = vcmp.gt.s32.totalorder (!%p916_p7), %v308_v9, 0  ;;  %s1474_s11 = sld [smem:[#allocation6 + %s265_s30]] (!%p916_p7)  ;;  %s269_s4 = sadd.s32 (!%p916_p7), 6, %s1446_s5 }
  0x7c   : > { %v294_v16 = vsel (!%p916_p7), %vm293_vm1, %v291_v8, 0  ;;  %v1477_v17 = vstv (!%p916_p7), %s258_s24  ;;  %v311_v18 = vsel (!%p916_p7), %vm310_vm2, %v308_v9, 0  ;;  %v326_v19 = vadd.s32 (!%p916_p7), 4294967292, %v1460_v6  ;;  %s1490_s21 = sld [smem:[#allocation6 + %s267_s20]] (!%p916_p7)  ;;  %s271_s1 = sadd.s32 (!%p916_p7), 7, %s1446_s5 }
  0x7d   : > { %vm301_vm3 = vcmp.eq.s32.totalorder %v1462_v7, %v294_v16  ;;  %vm302_vm4 = vcmp.eq.s32.totalorder %v1462_v7, %v292_v14  ;;  %vm318_vm5 = vcmp.eq.s32.totalorder %v1462_v7, %v311_v18  ;;  %vm319_vm6 = vcmp.eq.s32.totalorder %v1462_v7, %v309_v15  ;;  %s1504_s27 = sld [smem:[#allocation6 + %s269_s4]]  ;;  %s273_s7 = sadd.s32 8, %s1446_s5 }
  0x7e   : > { %v304_v20 = vsel %vm301_vm3, %v1477_v17, 0.0  ;;  %v305_v21 = vsel %vm302_vm4, %v1477_v17, 0.0  ;;  %v1488_v22 = vstv %s1450_s29  ;;  %vm327_vm8 = vcmp.gt.s32.totalorder %v325_v10, 0  ;;  %s1513_s24 = sld [smem:[#allocation6 + %s271_s1]]  ;;  %s275_s29 = sadd.s32 9, %s1446_s5 }
  0x7f   : > { %v321_v23 = vsel %vm318_vm5, %v1488_v22, 0.0  ;;  %v322_v24 = vsel %vm319_vm6, %v1488_v22, 0.0  ;;  %v328_v25 = vsel %vm327_vm8, %v325_v10, 0  ;;  %vm336_vm9 = vcmp.eq.s32.totalorder %v1462_v7, %v326_v19  ;;  %s1520_s0 = sld [smem:[#allocation6 + %s273_s7]]  ;;  %s279_s30 = sadd.s32 11, %s1446_s5 }
  0x80   : > { %v323_v26 = vadd.f32 %v321_v23, %v304_v20  ;;  %v324_v27 = vadd.f32 %v322_v24, %v305_v21  ;;  %vm335_vm10 = vcmp.eq.s32.totalorder %v1462_v7, %v328_v25  ;;  %v1498_v28 = vstv %s1455_s9  ;;  %s1537_s8 = sld [smem:[#allocation6 + %s275_s29]]  ;;  %s277_s9 = sadd.s32 10, %s1446_s5 }
  0x81   : > { %v338_v29 = vsel %vm335_vm10, %v1498_v28, 0.0  ;;  %v339_v30 = vsel %vm336_vm9, %v1498_v28, 0.0  ;;  %v343_v31 = vadd.s32 4294967293, %v1460_v6  ;;  %vm344_vm11 = vcmp.gt.s32.totalorder %v342_v11, 0  ;;  %s1552_s10 = sld [smem:[#allocation6 + %s277_s9]] }
  0x82   : > { %v340_v32 = vadd.f32 %v338_v29, %v323_v26  ;;  %v341_v33 = vadd.f32 %v339_v30, %v324_v27  ;;  %v345_v34 = vsel %vm344_vm11, %v342_v11, 0  ;;  %v1508_v35 = vstv %s1466_s26  ;;  %s1567_s26 = sld [smem:[#allocation6 + %s279_s30]] }
  0x83   : > { %vm352_vm12 = vcmp.eq.s32.totalorder %v1462_v7, %v345_v34  ;;  %vm353_vm13 = vcmp.eq.s32.totalorder %v1462_v7, %v343_v31  ;;  %v360_v36 = vadd.s32 4294967294, %v1460_v6  ;;  %vm361_vm14 = vcmp.gt.s32.totalorder %v359_v12, 0 }
  0x84   : > { %v355_v37 = vsel %vm352_vm12, %v1508_v35, 0.0  ;;  %v356_v38 = vsel %vm353_vm13, %v1508_v35, 0.0  ;;  %v362_v39 = vsel %vm361_vm14, %v359_v12, 0  ;;  %v1518_v40 = vstv %s1474_s11  ;;  %s281_s11 = sadd.s32 12, %s1446_s5 }
  0x85   : > { %v357_v41 = vadd.f32 %v355_v37, %v340_v32  ;;  %v358_v42 = vadd.f32 %v356_v38, %v341_v33  ;;  %vm369_vm15 = vcmp.eq.s32.totalorder %v1462_v7, %v362_v39  ;;  %vm370_vm0 = vcmp.eq.s32.totalorder %v1462_v7, %v360_v36  ;;  %s1579_s5 = sld [smem:[#allocation6 + %s281_s11]] }
  0x86   : > { %v372_v43 = vsel %vm369_vm15, %v1518_v40, 0.0  ;;  %v373_v44 = vsel %vm370_vm0, %v1518_v40, 0.0  ;;  %v377_v45 = vadd.s32 4294967295, %v1460_v6  ;;  %vm378_vm1 = vcmp.gt.s32.totalorder %v376_v13, 0 }
  0x87   : > { %v374_v46 = vadd.f32 %v372_v43, %v357_v41  ;;  %v375_v47 = vadd.f32 %v373_v44, %v358_v42  ;;  %v379_v48 = vsel %vm378_vm1, %v376_v13, 0  ;;  %v1529_v49 = vstv %s1490_s21 }
  0x88   : > { %vm386_vm2 = vcmp.eq.s32.totalorder %v1462_v7, %v379_v48  ;;  %vm387_vm3 = vcmp.eq.s32.totalorder %v1462_v7, %v377_v45  ;;  %v394_v50 = vsel %vm393_vm7, %v1453_v5, 0  ;;  %vm399_vm4 = vcmp.lt.s32.totalorder %v1460_v6, 15 }
  0x89   : > { %v389_v51 = vsel %vm386_vm2, %v1529_v49, 0.0  ;;  %v390_v52 = vsel %vm387_vm3, %v1529_v49, 0.0  ;;  %v400_v53 = vsel %vm399_vm4, %v1460_v6, 15  ;;  %vm401_vm5 = vcmp.eq.s32.totalorder %v1462_v7, %v394_v50 }
  0x8a   : > { %v391_v54 = vadd.f32 %v389_v51, %v374_v46  ;;  %v392_v55 = vadd.f32 %v390_v52, %v375_v47  ;;  %vm402_vm6 = vcmp.eq.s32.totalorder %v1462_v7, %v400_v53  ;;  %v1546_v56 = vstv %s1504_s27 }
  0x8b   : > { %v404_v57 = vsel %vm401_vm5, %v1546_v56, 0.0  ;;  %v405_v58 = vsel %vm402_vm6, %v1546_v56, 0.0  ;;  %v408_v59 = vadd.s32 1, %v1453_v5  ;;  %v409_v60 = vadd.s32 1, %v1460_v6 }
  0x8c   : > { %v406_v61 = vadd.f32 %v404_v57, %v391_v54  ;;  %v407_v62 = vadd.f32 %v405_v58, %v392_v55  ;;  %v1556_v63 = vstv %s1513_s24  ;;  %v425_v0 = vadd.s32 2, %v1453_v5 }
  0x8d   : > { %vm416_vm7 = vcmp.lt.s32.totalorder %v409_v60, 15  ;;  %vm418_vm8 = vcmp.eq.s32.totalorder %v1462_v7, %v408_v59  ;;  %v426_v1 = vadd.s32 2, %v1460_v6  ;;  %v1562_v2 = vstv %s1520_s0 }
  0x8e   : > { %v417_v3 = vsel %vm416_vm7, %v409_v60, 15  ;;  %v421_v4 = vsel %vm418_vm8, %v1556_v63, 0.0  ;;  %vm435_vm9 = vcmp.eq.s32.totalorder %v1462_v7, %v425_v0  ;;  %v442_v8 = vadd.s32 3, %v1453_v5 }
  0x8f   : > { %vm419_vm10 = vcmp.eq.s32.totalorder %v1462_v7, %v417_v3  ;;  %v423_v9 = vadd.f32 %v421_v4, %v406_v61  ;;  %vm433_vm11 = vcmp.lt.s32.totalorder %v426_v1, 15  ;;  %v438_v10 = vsel %vm435_vm9, %v1562_v2, 0.0 }
  0x90   : > { %v422_v11 = vsel %vm419_vm10, %v1556_v63, 0.0  ;;  %v434_v12 = vsel %vm433_vm11, %v426_v1, 15  ;;  %v443_v13 = vadd.s32 3, %v1460_v6  ;;  %vm452_vm12 = vcmp.eq.s32.totalorder %v1462_v7, %v442_v8 }
  0x91   : > { %v424_v14 = vadd.f32 %v422_v11, %v407_v62  ;;  %vm436_vm13 = vcmp.eq.s32.totalorder %v1462_v7, %v434_v12  ;;  %v440_v15 = vadd.f32 %v438_v10, %v423_v9  ;;  %v1577_v16 = vstv %s1537_s8 }
  0x92   : > { %v439_v18 = vsel %vm436_vm13, %v1562_v2, 0.0  ;;  %vm450_vm14 = vcmp.lt.s32.totalorder %v443_v13, 15  ;;  %v455_v19 = vsel %vm452_vm12, %v1577_v16, 0.0  ;;  %v459_v20 = vadd.s32 4, %v1453_v5 }
  0x93   : > { %v441_v21 = vadd.f32 %v439_v18, %v424_v14  ;;  %v451_v23 = vsel %vm450_vm14, %v443_v13, 15  ;;  %v457_v24 = vadd.f32 %v455_v19, %v440_v15  ;;  %v460_v25 = vadd.s32 4, %v1460_v6 }
  0x94   : > { %vm453_vm15 = vcmp.eq.s32.totalorder %v1462_v7, %v451_v23  ;;  %vm469_vm0 = vcmp.eq.s32.totalorder %v1462_v7, %v459_v20  ;;  %v1588_v26 = vstv %s1552_s10  ;;  %v476_v27 = vadd.s32 5, %v1453_v5 }
  0x95   : > { %v456_v29 = vsel %vm453_vm15, %v1577_v16, 0.0  ;;  %vm467_vm1 = vcmp.lt.s32.totalorder %v460_v25, 15  ;;  %v472_v30 = vsel %vm469_vm0, %v1588_v26, 0.0  ;;  %v477_v31 = vadd.s32 5, %v1460_v6 }
  0x96   : > { %v458_v32 = vadd.f32 %v456_v29, %v441_v21  ;;  %v468_v33 = vsel %vm467_vm1, %v460_v25, 15  ;;  %v474_v34 = vadd.f32 %v472_v30, %v457_v24  ;;  %vm486_vm2 = vcmp.eq.s32.totalorder %v1462_v7, %v476_v27 }
  0x97   : > { %vm470_vm3 = vcmp.eq.s32.totalorder %v1462_v7, %v468_v33  ;;  %vm484_vm4 = vcmp.lt.s32.totalorder %v477_v31, 15  ;;  %v1597_v36 = vstv %s1567_s26  ;;  %v493_v37 = vadd.s32 6, %v1453_v5 }
  0x98   : > { %v473_v38 = vsel %vm470_vm3, %v1588_v26, 0.0  ;;  %v485_v39 = vsel %vm484_vm4, %v477_v31, 15  ;;  %v489_v41 = vsel %vm486_vm2, %v1597_v36, 0.0  ;;  %v494_v42 = vadd.s32 6, %v1460_v6 }
  0x99   : > { %v475_v43 = vadd.f32 %v473_v38, %v458_v32  ;;  %vm487_vm5 = vcmp.eq.s32.totalorder %v1462_v7, %v485_v39  ;;  %v491_v44 = vadd.f32 %v489_v41, %v474_v34  ;;  %vm503_vm6 = vcmp.eq.s32.totalorder %v1462_v7, %v493_v37 }
  0x9a   : > { %v490_v45 = vsel %vm487_vm5, %v1597_v36, 0.0  ;;  %vm501_vm7 = vcmp.lt.s32.totalorder %v494_v42, 15  ;;  %v1607_v46 = vstv %s1579_s5  ;;  %vm659_vm9 = vcmask 130048  }
  0x9b   : > { %v492_v47 = vadd.f32 %v490_v45, %v475_v43  ;;  %v502_v48 = vsel %vm501_vm7, %v494_v42, 15  ;;  %v506_v50 = vsel %vm503_vm6, %v1607_v46, 0.0  ;;  %v513_v55 = vadd.s32 4294967290, %v1462_v7 }
  0x9c   : > { %vm504_vm8 = vcmp.eq.s32.totalorder %v1462_v7, %v502_v48  ;;  %v508_v51 = vadd.f32 %v506_v50, %v491_v44  ;;  %v524_v57 = vadd.s32 4294967291, %v1462_v7  ;;  %v535_v58 = vadd.s32 4294967292, %v1462_v7 }
  0x9d   : > { %v507_v52 = vsel %vm504_vm8, %v1607_v46, 0.0  ;;  %vm514_vm10 = vcmp.gt.s32.totalorder %v513_v55, 0  ;;  %v546_v61 = vadd.s32 4294967293, %v1462_v7  ;;  %v557_v14 = vadd.s32 4294967294, %v1462_v7 }
  0x9e   : > { %v509_v53 = vadd.f32 %v507_v52, %v492_v47  ;;  %vm525_vm11 = vcmp.gt.s32.totalorder %v524_v57, 0  ;;  %v515_v59 = vsel %vm514_vm10, %v513_v55, 0  ;;  %vm536_vm14 = vcmp.gt.s32.totalorder %v535_v58, 0 }
  0x9f   : > { %v526_v60 = vsel %vm525_vm11, %v524_v57, 0  ;;  %vm516_vm12 = vcmp.lt.s32.totalorder %v515_v59, 15  ;;  %v537_v1 = vsel %vm536_vm14, %v535_v58, 0  ;;  %vm547_vm4 = vcmp.gt.s32.totalorder %v546_v61, 0 }
  0xa0   : > { %v510_v54 = vpack.c.bf16 %v509_v53, %v508_v51  ;;  %vm527_vm13 = vcmp.lt.s32.totalorder %v526_v60, 15  ;;  %v517_v62 = vsel %vm516_vm12, %v515_v59, 15  ;;  %vm538_vm3 = vcmp.lt.s32.totalorder %v537_v1, 15 }
  0xa1   : > { %v528_v0 = vsel %vm527_vm13, %v526_v60, 15  ;;  %vm518_vm15 = vcmp.eq.s32.totalorder %v1453_v5, %v517_v62  ;;  %vm519_vm0 = vcmp.eq.s32.totalorder %v1460_v6, %v517_v62  ;;  %v539_v12 = vsel %vm538_vm3, %v537_v1, 15 }
  0xa2   : > { %934 = vmatmul.mubr.msk.bf16.vlgmr.msra.gmra.mrb[0].mxu0 %vm659_vm9, %v510_v54  ;;  %vm529_vm1 = vcmp.eq.s32.totalorder %v1453_v5, %v528_v0  ;;  %vm530_vm2 = vcmp.eq.s32.totalorder %v1460_v6, %v528_v0  ;;  %v520_v3 = vsel %vm518_vm15, %v1477_v17, 0.0  ;;  %v521_v4 = vsel %vm519_vm0, %v1477_v17, 0.0 }
  0xa3   : > { %v531_v8 = vsel %vm529_vm1, %v1488_v22, 0.0  ;;  %v532_v9 = vsel %vm530_vm2, %v1488_v22, 0.0  ;;  %v548_v13 = vsel %vm547_vm4, %v546_v61, 0  ;;  %v568_v15 = vadd.s32 4294967295, %v1462_v7 }
  0xa4   : > { %v533_v10 = vadd.f32 %v531_v8, %v520_v3  ;;  %v534_v11 = vadd.f32 %v532_v9, %v521_v4  ;;  %vm540_vm5 = vcmp.eq.s32.totalorder %v1453_v5, %v539_v12  ;;  %vm541_vm6 = vcmp.eq.s32.totalorder %v1460_v6, %v539_v12 }
  0xa5   : > { %vm549_vm7 = vcmp.lt.s32.totalorder %v548_v13, 15  ;;  %v542_v17 = vsel %vm540_vm5, %v1498_v28, 0.0  ;;  %v543_v18 = vsel %vm541_vm6, %v1498_v28, 0.0  ;;  %vm558_vm8 = vcmp.gt.s32.totalorder %v557_v14, 0 }
  0xa6   : > { %v550_v22 = vsel %vm549_vm7, %v548_v13, 15  ;;  %v544_v19 = vadd.f32 %v542_v17, %v533_v10  ;;  %v545_v20 = vadd.f32 %v543_v18, %v534_v11  ;;  %v559_v24 = vsel %vm558_vm8, %v557_v14, 0 }
  0xa7   : > { %vm551_vm10 = vcmp.eq.s32.totalorder %v1453_v5, %v550_v22  ;;  %vm552_vm11 = vcmp.eq.s32.totalorder %v1460_v6, %v550_v22  ;;  %vm569_vm12 = vcmp.gt.s32.totalorder %v568_v15, 0  ;;  %vm560_vm13 = vcmp.lt.s32.totalorder %v559_v24, 15 }
  0xa8   : > { %v553_v21 = vsel %vm551_vm10, %v1508_v35, 0.0  ;;  %v554_v23 = vsel %vm552_vm11, %v1508_v35, 0.0  ;;  %v570_v29 = vsel %vm569_vm12, %v568_v15, 0  ;;  %v561_v30 = vsel %vm560_vm13, %v559_v24, 15 }
  0xa9   : > { %v555_v25 = vadd.f32 %v553_v21, %v544_v19  ;;  %v556_v27 = vadd.f32 %v554_v23, %v545_v20  ;;  %vm571_vm14 = vcmp.lt.s32.totalorder %v570_v29, 15  ;;  %vm579_vm15 = vcmp.gt.s32.totalorder %v1462_v7, 0 }
  0xaa   : > { %v589_v28 = vadd.s32 1, %v1462_v7  ;;  %vm562_vm0 = vcmp.eq.s32.totalorder %v1453_v5, %v561_v30  ;;  %vm563_vm1 = vcmp.eq.s32.totalorder %v1460_v6, %v561_v30  ;;  %v572_v31 = vsel %vm571_vm14, %v570_v29, 15 }
  0xab   : > { %v580_v32 = vsel %vm579_vm15, %v1462_v7, 0  ;;  %v564_v35 = vsel %vm562_vm0, %v1518_v40, 0.0  ;;  %v565_v33 = vsel %vm563_vm1, %v1518_v40, 0.0  ;;  %vm573_vm2 = vcmp.eq.s32.totalorder %v1453_v5, %v572_v31 }
  0xac   : > { %vm574_vm3 = vcmp.eq.s32.totalorder %v1460_v6, %v572_v31  ;;  %v566_v34 = vadd.f32 %v564_v35, %v555_v25  ;;  %v567_v37 = vadd.f32 %v565_v33, %v556_v27  ;;  %v575_v38 = vsel %vm573_vm2, %v1529_v49, 0.0 }
  0xad   : > { %v576_v39 = vsel %vm574_vm3, %v1529_v49, 0.0  ;;  %vm581_vm4 = vcmp.lt.s32.totalorder %v580_v32, 15  ;;  %vm592_vm5 = vcmp.lt.s32.totalorder %v589_v28, 15  ;;  %v600_v41 = vadd.s32 2, %v1462_v7 }
  0xae   : > { %v611_v42 = vadd.s32 3, %v1462_v7  ;;  %v577_v43 = vadd.f32 %v575_v38, %v566_v34  ;;  %v578_v44 = vadd.f32 %v576_v39, %v567_v37  ;;  %v582_v45 = vsel %vm581_vm4, %v580_v32, 15 }
  0xaf   : > { %v593_v40 = vsel %vm592_vm5, %v589_v28, 15  ;;  %vm583_vm6 = vcmp.eq.s32.totalorder %v1453_v5, %v582_v45  ;;  %vm584_vm7 = vcmp.eq.s32.totalorder %v1460_v6, %v582_v45  ;;  %vm603_vm11 = vcmp.lt.s32.totalorder %v600_v41, 15 }
  0xb0   : > { %vm594_vm8 = vcmp.eq.s32.totalorder %v1453_v5, %v593_v40  ;;  %vm595_vm10 = vcmp.eq.s32.totalorder %v1460_v6, %v593_v40  ;;  %v585_v49 = vsel %vm583_vm6, %v1546_v56, 0.0  ;;  %v586_v47 = vsel %vm584_vm7, %v1546_v56, 0.0 }
  0xb1   : > { %v596_v48 = vsel %vm594_vm8, %v1556_v63, 0.0  ;;  %v597_v50 = vsel %vm595_vm10, %v1556_v63, 0.0  ;;  %v587_v51 = vadd.f32 %v585_v49, %v577_v43  ;;  %v588_v52 = vadd.f32 %v586_v47, %v578_v44 }
  0xb2   : > { %vm614_vm12 = vcmp.lt.s32.totalorder %v611_v42, 15  ;;  %v604_v53 = vsel %vm603_vm11, %v600_v41, 15  ;;  %v622_v55 = vadd.s32 4, %v1462_v7  ;;  %v633_v57 = vadd.s32 5, %v1462_v7 }
  0xb3   : > { %v615_v54 = vsel %vm614_vm12, %v611_v42, 15  ;;  %v598_v58 = vadd.f32 %v596_v48, %v587_v51  ;;  %v599_v59 = vadd.f32 %v597_v50, %v588_v52  ;;  %vm605_vm13 = vcmp.eq.s32.totalorder %v1453_v5, %v604_v53 }
  0xb4   : > { %vm606_vm14 = vcmp.eq.s32.totalorder %v1460_v6, %v604_v53  ;;  %v607_v56 = vsel %vm605_vm13, %v1562_v2, 0.0  ;;  %vm616_vm15 = vcmp.eq.s32.totalorder %v1453_v5, %v615_v54  ;;  %vm617_vm0 = vcmp.eq.s32.totalorder %v1460_v6, %v615_v54 }
  0xb5   : > { %v608_v63 = vsel %vm606_vm14, %v1562_v2, 0.0  ;;  %v609_v60 = vadd.f32 %v607_v56, %v598_v58  ;;  %v618_v62 = vsel %vm616_vm15, %v1577_v16, 0.0  ;;  %v619_v0 = vsel %vm617_vm0, %v1577_v16, 0.0 }
  0xb6   : > { %v610_v61 = vadd.f32 %v608_v63, %v599_v59  ;;  %vm625_vm1 = vcmp.lt.s32.totalorder %v622_v55, 15  ;;  %vm636_vm2 = vcmp.lt.s32.totalorder %v633_v57, 15  ;;  %v644_v1 = vadd.s32 6, %v1462_v7 }
  0xb7   : > { %v620_v3 = vadd.f32 %v618_v62, %v609_v60  ;;  %v626_v8 = vsel %vm625_vm1, %v622_v55, 15  ;;  %v637_v9 = vsel %vm636_vm2, %v633_v57, 15 }
  0xb8   : > { %v621_v4 = vadd.f32 %v619_v0, %v610_v61  ;;  %vm627_vm3 = vcmp.eq.s32.totalorder %v1453_v5, %v626_v8  ;;  %vm628_vm4 = vcmp.eq.s32.totalorder %v1460_v6, %v626_v8  ;;  %vm638_vm5 = vcmp.eq.s32.totalorder %v1453_v5, %v637_v9 }
  0xb9   : > { %vm639_vm6 = vcmp.eq.s32.totalorder %v1460_v6, %v637_v9  ;;  %v629_v2 = vsel %vm627_vm3, %v1588_v26, 0.0  ;;  %v630_v16 = vsel %vm628_vm4, %v1588_v26, 0.0  ;;  %v640_v10 = vsel %vm638_vm5, %v1597_v36, 0.0 }
  0xba   : > { %v641_v7 = vsel %vm639_vm6, %v1597_v36, 0.0  ;;  %v631_v11 = vadd.f32 %v629_v2, %v620_v3  ;;  %v632_v12 = vadd.f32 %v630_v16, %v621_v4  ;;  %vm647_vm7 = vcmp.lt.s32.totalorder %v644_v1, 15 }
  0xbb   : > { %v648_v13 = vsel %vm647_vm7, %v644_v1, 15 }
  0xbc   : > { %v642_v14 = vadd.f32 %v640_v10, %v631_v11  ;;  %v643_v15 = vadd.f32 %v641_v7, %v632_v12  ;;  %vm649_vm8 = vcmp.eq.s32.totalorder %v1453_v5, %v648_v13  ;;  %vm650_vm10 = vcmp.eq.s32.totalorder %v1460_v6, %v648_v13 }
  0xbd   : > { %v651_v17 = vsel %vm649_vm8, %v1607_v46, 0.0  ;;  %v652_v26 = vsel %vm650_vm10, %v1607_v46, 0.0 }
  0xbe   : > { %v653_v18 = vadd.f32 %v651_v17, %v642_v14  ;;  %v654_v22 = vadd.f32 %v652_v26, %v643_v15 }
  0xc0   : > { %v655_v19 = vpack.c.bf16 %v654_v22, %v653_v18 }
  0xc2   : > { %938 = vmatpush3.bf16.msra.mxu1 %v655_v19 }
 0x175   : > { %v697_v36 = vpop.f32.mrb[0].mxu0 }
 0x176   : > { %v935_v20 = vpop.f32.mrb[1].mxu0 }
 0x177   : > { %v700_v21 = vpop.f32.mrb[2].mxu0 }
 0x178   : > { %v704_v23 = vpack.c.bf16 %v700_v21, %v697_v36  ;;  %v936_v24 = vpop.f32.mrb[3].mxu0 }
 0x17a   : > { %940 = vmatmul.mubr.msk.bf16.vlgmr.msra.gmra.mrb[0].mxu1 %vm659_vm9, %v704_v23 }
 0x24d   : > { %v742_v25 = vpop.f32.mrb[0].mxu1 }
 0x24e   : > { %749 = vst.msk [vmem:[%s1441_s23] sm:$0xff] %vm659_vm9, %v742_v25  ;;  %v941_v5 = vpop.f32.mrb[1].mxu1 }
 0x24f   : > { %v745_v6 = vpop.f32.mrb[2].mxu1 }
 0x250   : > { %750 = vst.msk [vmem:[%s1441_s23 + $0x8] sm:$0xff] %vm659_vm9, %v745_v6  ;;  %v942_v27 = vpop.f32.mrb[3].mxu1 }
 0x251 PF: > { %s751_s20 = sld [smem:[#allocation2 + %s1198_s16]] }
 0x257   : > { %p920_p8 = scmp.ne.s32.totalorder %s751_s20, 0 }
 0x258   : > { %v756_v46 = vld [vmem:[%s1434_s28] sm:$0xff] (!%p920_p8)  ;;  %vm758_vm11 = vcmask (!%p920_p8), 130048   ;;  %v757_v29 = vld [vmem:[%s1434_s28 + $0x8] sm:$0xff] (!%p920_p8) }
 0x259   : > { %755 = sbr.rel (%p920_p8) target bundleno = 608 (0x260), region = 52  ;;  %759 = vst.msk [vmem:[%s1441_s23] sm:$0xff] (!%p920_p8), %vm758_vm11, %v756_v46  ;;  %760 = vst.msk [vmem:[%s1441_s23 + $0x8] sm:$0xff] (!%p920_p8), %vm758_vm11, %v757_v29 }
 0x260 PF: > { %s922_s21 = sshll.u32 %s1194_s15, 1  ;;  %s923_s4 = sshll.u32 %s1198_s16, 3 }
 0x261   : > { %s780_s1 = sshll.u32 %s1441_s23, 4  ;;  %s777_s27 = sadd.s32 %s923_s4, %s922_s21  ;;  %s1692_s1 = int_to_ptr.vmem [resolvable:$true] %s780_s1 }
 0x262   : > { %s924_s7 = sshll.u32 %s777_s27, 7  ;;  %s762_s29 = scalar_lea.sflag [#allocation4], %s1430_s6 }
 0x263   : > { %s1697_s0 = scalar_lea.hbm %s1754_s3, %s924_s7  ;;  %s1104_s8 = scalar_lea.vmem %s1692_s1, 256 }
 0x264   : > { %p1105_p12 = scmp.ne.s32.totalorder %s1692_s1, %s1104_s8  ;;  %p1781_p1 = scmp.ne.s32.totalorder %s1767_s25, 0 }
 0x265   : > { %s1219_s15 = smov [#allocation9]  }
 0x266   : > { %p1106_p5 = pnand %p1105_p12, %p1781_p1  ;;  %s1108_s16 = sshll.u32 %s1219_s15, 4  ;;  %s1109_s16 = int_to_ptr.vmem [resolvable:$false] %s1108_s16 }
 0x267   : > { %s1110_s23 = scalar_lea.vmem %s1109_s16, 512  ;;  %p1111_p4 = scmp.lt.s32.totalorder %s1692_s1, %s1109_s16 }
 0x268   : > { %p1107_p6 = pneg %p1106_p5  ;;  %p1112_p2 = scmp.lt.s32.totalorder %s1110_s23, %s1104_s8 }
 0x26a   : > { %p1113_p0 = por %p1112_p2, %p1111_p4 }
 0x26c   : > { %p1114_p10 = pnand %p1113_p0, %p1107_p6 }
 0x26e   : > { %1117 = shalt.err (!%p1114_p10)
}
 0x26f   : > { %s1118_s9 = scalar_lea.hbm %s1697_s0, 256  ;;  %s1122_s26 = scalar_lea.hbm %s1754_s3, 2048 }
 0x270   : > { %p1119_p11 = scmp.ne.s32.totalorder %s1697_s0, %s1118_s9  ;;  %p1123_p3 = scmp.lt.u32.totalorder %s1697_s0, %s1754_s3 }
 0x271   : > { %p1124_p7 = scmp.lt.u32.totalorder %s1122_s26, %s1118_s9  ;;  %p1126_p12 = scmp.lt.u32.totalorder %s1118_s9, %s1697_s0 }
 0x272   : > { %p1120_p13 = pnand %p1119_p11, %p1781_p1 }
 0x273   : > { %p1125_p8 = por %p1124_p7, %p1123_p3 }
 0x274   : > { %p1121_p9 = pneg %p1120_p13 }
 0x275   : > { %p1127_p5 = por %p1126_p12, %p1125_p8 }
 0x277   : > { %p1128_p6 = pnand %p1127_p5, %p1121_p9 }
 0x279   : > { %1131 = shalt.err (!%p1128_p6)
}
 0x27a   : > { %s1220_s20 = smov 128   ;;  %s1221_s21 = smov 8  }
 0x27b   : > { %953 = dma.vmem_to_hbm [thread:$0]  (%p1781_p1), %s1692_s1, 256, %s1697_s0, %s762_s29, %s1220_s20, %s1220_s20, %s1221_s21  }
 0x27c PF: > { %s1782_s4 = sld [smem:[#allocation15_spill]]  ;;  %p975_p4 = scmp.ge.s32.totalorder %s1210_s19, 2 }
 0x27d   : > { %s795_s27 = sand.u32 1, %s1182_s12  }
 0x27e   : > { %s796_s7 = scalar_lea.sflag [#allocation4], %s795_s27 }
 0x282   : > { %p1783_p2 = scmp.ne.s32.totalorder %s1782_s4, 0 }
 0x284   : > { %p967_p0 = pnand %p975_p4, %p1783_p2 }
 0x286   : > { %1177 = dma.done.wait (!%p967_p0), %s796_s7, 256  }
 0x287   : > { %1179 = vsyncadd (!%p967_p0), %s796_s7, 4294967040  ;;  %s21_s19 = sadd.s32 1, %s1210_s19   ;;  %s1784_s15 = sld [smem:[#allocation14_spill]] }
 0x288   : > { %p18_p10 = scmp.ge.s32.totalorder %s21_s19, 10   ;;  %s1785_s25 = sld [smem:[#allocation16_spill]] }
 0x289   : > { %s1786_s12 = smov %s1186_s13  ;;  %s1787_s13 = smov %s1190_s14 }
 0x28a   : > { %s1788_s14 = smov %s1389_s17  ;;  %s1789_s16 = smov %s1206_s18 }
 0x28b   : > { %s1791_s18 = smov %s1797_s22  ;;  %20 = sbr.rel (!%p18_p10) target bundleno = 12 (0xc), region = 94 }
 0x28e   : > { %s1790_s17 = smov %s1785_s25 }
 0x292   :  { %801 = vsyncpa [#allocation3], 1 }
 0x293   :  { %803 = vsyncpa [#allocation3 + $0x1], 1 }
 0x294   :  { %804 = vsyncpa [#allocation4], 1 }
 0x295   :  { %806 = vsyncpa [#allocation4 + $0x1], 1 }
 0x296   :  { %807 = vsyncpa [#allocation5], 1 }
 0x297   :  { %809 = vsyncpa [#allocation5 + $0x1], 1 }
 0x298   :  { %810 = vsyncpa [#allocation7], 1 }

</bundles_post_ra>
